<compile_context>
chip_gen: v6e
topology: v6e:2x2x1
jax: 0.10.0
libtpu: 0.0.40
codegen_flags: <defaults>
</compile_context>

<pallas_src>
import math

import jax
import jax.numpy as jnp
from jax import lax
from jax.experimental import pallas as pl
from jax.experimental.pallas import tpu as pltpu

H1, H2, OUT = 400, 300, 1
TB_CAP = 1024  # batch-tile cap: keeps VMEM small everywhere and G>=2 on v7x for B>1024


def _round_up(v, m):
    return ((v + m - 1) // m) * m


def actor_kernel(x_ref, w1_ref, w2_ref, b2_ref, w3_ref, b3_ref, o_ref):
    # x_ref: (TB, IN+1) f32 row tile; the last column is the constant 1.0 that
    # folds fc1's bias into the matmul.
    x = x_ref[...].astype(jnp.bfloat16)

    # fc1 (+ folded bias) + ReLU on the MXU.  Contract the feature axis of both
    # operands: (H1, IN+1) x (TB, IN+1) -> (H1, TB); batch lands on the lane
    # axis without any host-side transpose.  bf16 inputs, f32 accumulation.
    h1 = lax.dot_general(w1_ref[...], x,
                         dimension_numbers=(((1,), (1,)), ((), ())),
                         preferred_element_type=jnp.float32)
    h1 = jnp.maximum(h1, 0.0)

    # fc2 + ReLU: (H2, H1) @ (H1, TB) -> (H2, TB).
    h2 = jnp.dot(w2_ref[...], h1.astype(jnp.bfloat16),
                 preferred_element_type=jnp.float32)
    h2 = jnp.maximum(h2 + b2_ref[...], 0.0)

    # fc3 (300 -> 1) off the MXU: VPU multiply + sublane reduction -> (1, TB).
    h3 = jnp.sum(h2 * w3_ref[...], axis=0, keepdims=True) + b3_ref[...]

    # tanh on the EUP; lane-dense (1, TB) store.
    o_ref[...] = jnp.tanh(h3)


def actor_forward(x, params):
    """x: (..., input_dim) float32.  Returns (B, 1) float32 (B = flattened batch)."""
    w1, b1, w2, b2, w3, b3 = params
    in_dim = w1.shape[1]

    # Mimic PyTorch's x.view(-1, input_dim).
    x = x.reshape(-1, in_dim).astype(jnp.float32)
    B = x.shape[0]

    # Adaptive batch tile (lane axis of the intermediates/output -> multiple of 128).
    TB = min(TB_CAP, _round_up(B, 128))
    G = pl.cdiv(B, TB)
    Bp = G * TB

    # One tiny wrapper op: pad the ragged batch tail with zeros AND append the
    # constant-1 bias column in a single jnp.pad (no transpose, no extra pass).
    x_aug = jnp.pad(x, ((0, Bp - B), (0, 1)),
                    constant_values=((0.0, 0.0), (0.0, 1.0)))  # (Bp, IN+1)

    # Host-side weight prep (done once per call; trivial sizes).
    w1_aug = jnp.concatenate([w1, b1], axis=1).astype(jnp.bfloat16)  # (H1, IN+1)
    w2b = w2.astype(jnp.bfloat16)

    resident = lambda i: (0, 0)  # weights/biases: same block every grid step

    flops = 2 * Bp * ((in_dim + 1) * H1 + H1 * H2 + H2 * OUT)
    bytes_accessed = (x_aug.size * 4 + Bp * 4 + w1_aug.size * 2 + w2b.size * 2
                      + (b2.size + w3.size + b3.size) * 4)

    out = pl.pallas_call(
        actor_kernel,
        out_shape=jax.ShapeDtypeStruct((1, Bp), jnp.float32),
        grid=(G,),
        in_specs=[
            pl.BlockSpec((TB, in_dim + 1), lambda i: (i, 0)),  # streamed x row tiles
            pl.BlockSpec((H1, in_dim + 1), resident),          # [w1 | b1] (resident, bf16)
            pl.BlockSpec((H2, H1), resident),                  # w2 (resident, bf16)
            pl.BlockSpec((H2, 1), resident),                   # b2
            pl.BlockSpec((H2, 1), resident),                   # w3 (VPU path)
            pl.BlockSpec((1, 1), resident),                    # b3
        ],
        out_specs=pl.BlockSpec((1, TB), lambda i: (0, i)),     # lane-dense output
        compiler_params=pltpu.CompilerParams(
            dimension_semantics=("parallel",)),
        cost_estimate=pl.CostEstimate(
            flops=flops, transcendentals=Bp, bytes_accessed=bytes_accessed),
    )(x_aug, w1_aug, w2b, b2, w3, b3)

    return out[0, :B].reshape(B, 1)


def init_actor_params(key, input_dim=11, init_w=0.003):
    """Deterministic init matching the PyTorch module's init_weights().

    Weights kept in PyTorch-native (out_features, in_features) layout; biases
    as (out_features, 1) columns (the kernel computes W @ x^T + b).
      - fc1.weight ~ U(-1/sqrt(input_dim), 1/sqrt(input_dim))   (fanin_init)
      - fc2.weight ~ U(-1/sqrt(400), 1/sqrt(400))               (fanin_init)
      - fc3.weight ~ U(-init_w, init_w)
      - biases keep nn.Linear's default U(-1/sqrt(fan_in), 1/sqrt(fan_in))
        (init_weights() in the reference module only touches the weights).
    """
    ks = jax.random.split(key, 6)
    v1 = 1.0 / math.sqrt(input_dim)
    v2 = 1.0 / math.sqrt(H1)
    v3 = 1.0 / math.sqrt(H2)

    w1 = jax.random.uniform(ks[0], (H1, input_dim), jnp.float32, -v1, v1)
    b1 = jax.random.uniform(ks[1], (H1, 1), jnp.float32, -v1, v1)
    w2 = jax.random.uniform(ks[2], (H2, H1), jnp.float32, -v2, v2)
    b2 = jax.random.uniform(ks[3], (H2, 1), jnp.float32, -v2, v2)
    w3 = jax.random.uniform(ks[4], (H2, OUT), jnp.float32, -init_w, init_w)
    b3 = jax.random.uniform(ks[5], (OUT, 1), jnp.float32, -v3, v3)
    return (w1, b1, w2, b2, w3, b3)


def actor_reference(x, params):
    """Pure-JAX (f32) reference for correctness checking."""
    w1, b1, w2, b2, w3, b3 = params
    x = x.reshape(-1, w1.shape[1])
    h = jnp.maximum(x @ w1.T + b1[:, 0], 0.0)
    h = jnp.maximum(h @ w2.T + b2[:, 0], 0.0)
    return jnp.tanh(h @ w3 + b3[0])


if __name__ == "__main__":
    key = jax.random.PRNGKey(0)
    k_params, k_x = jax.random.split(key)

    input_dim = 11  # DoubleInvertedPendulum observation size
    params = init_actor_params(k_params, input_dim=input_dim)

    # Primary small demo batch, plus a ragged-tail case and a multi-tile case.
    for batch in (8, 200, 1500):
        kx = jax.random.fold_in(k_x, batch)
        x = jax.random.normal(kx, (batch, input_dim), jnp.float32)

        out = actor_forward(x, params)
        out = jax.block_until_ready(out)

        ref = actor_reference(x, params)
        assert out.shape == (batch, 1), out.shape
        err = float(jnp.max(jnp.abs(out - ref)))
        # bf16 MXU inputs (f32 accumulation): loosened f32 tolerance.
        assert err < 2e-2, ("mismatch vs reference", batch, err)

    print("KERNEL_OK")
</pallas_src>

<mosaic_0001>
module attributes {stable_mosaic.version = 11 : i64} {
  func.func @actor_kernel(%arg0: i32, %arg1: memref<128x12xf32, #tpu.memory_space<vmem>>, %arg2: memref<400x12xbf16, #tpu.memory_space<vmem>>, %arg3: memref<300x400xbf16, #tpu.memory_space<vmem>>, %arg4: memref<300x1xf32, #tpu.memory_space<vmem>>, %arg5: memref<300x1xf32, #tpu.memory_space<vmem>>, %arg6: memref<1x1xf32, #tpu.memory_space<vmem>>, %arg7: memref<1x128xf32, #tpu.memory_space<vmem>>) attributes {dimension_semantics = [#tpu.dimension_semantics<parallel>], iteration_bounds = array<i64: 1>, scalar_prefetch = 0 : i64, scratch_operands = 0 : i64, tpu.core_type = #tpu.core_type<tc>, window_params = [{transform_indices = @transform_0, window_bounds = array<i64: 128, 12>}, {pipeline_mode = #tpu.pipeline_mode<synchronous>, transform_indices = @transform_1, window_bounds = array<i64: 400, 12>}, {pipeline_mode = #tpu.pipeline_mode<synchronous>, transform_indices = @transform_2, window_bounds = array<i64: 300, 400>}, {pipeline_mode = #tpu.pipeline_mode<synchronous>, transform_indices = @transform_3, window_bounds = array<i64: 300, 1>}, {pipeline_mode = #tpu.pipeline_mode<synchronous>, transform_indices = @transform_4, window_bounds = array<i64: 300, 1>}, {pipeline_mode = #tpu.pipeline_mode<synchronous>, transform_indices = @transform_5, window_bounds = array<i64: 1, 1>}, {transform_indices = @transform_6, window_bounds = array<i64: 1, 128>}]} {
    %c0 = arith.constant 0 : index
    %c0_0 = arith.constant 0 : index
    %0 = vector.load %arg1[%c0, %c0_0] : memref<128x12xf32, #tpu.memory_space<vmem>>, vector<128x12xf32>
    %1 = arith.truncf %0 : vector<128x12xf32> to vector<128x12xbf16>
    %c0_1 = arith.constant 0 : index
    %c0_2 = arith.constant 0 : index
    %2 = vector.load %arg2[%c0_1, %c0_2] : memref<400x12xbf16, #tpu.memory_space<vmem>>, vector<400x12xbf16>
    %cst = arith.constant dense<0.000000e+00> : vector<400x128xf32>
    %3 = tpu.matmul %2, %1, %cst {dimension_numbers = #tpu.dot_dimension_numbers<[1], [1], [0], [0], [0, 0, 1, 0], [], []>} : vector<400x12xbf16>, vector<128x12xbf16>, vector<400x128xf32> -> vector<400x128xf32>
    %cst_3 = arith.constant 0.000000e+00 : f32
    %4 = vector.broadcast %cst_3 : f32 to vector<400x128xf32>
    %5 = arith.maximumf %3, %4 : vector<400x128xf32>
    %c0_4 = arith.constant 0 : index
    %c0_5 = arith.constant 0 : index
    %6 = vector.load %arg3[%c0_4, %c0_5] : memref<300x400xbf16, #tpu.memory_space<vmem>>, vector<300x400xbf16>
    %7 = arith.truncf %5 : vector<400x128xf32> to vector<400x128xbf16>
    %cst_6 = arith.constant dense<0.000000e+00> : vector<300x128xf32>
    %8 = tpu.matmul %6, %7, %cst_6 {dimension_numbers = #tpu.dot_dimension_numbers<[1], [0], [0], [1], [0, 0, 1, 1], [], []>} : vector<300x400xbf16>, vector<400x128xbf16>, vector<300x128xf32> -> vector<300x128xf32>
    %c0_7 = arith.constant 0 : index
    %c0_8 = arith.constant 0 : index
    %9 = vector.load %arg4[%c0_7, %c0_8] : memref<300x1xf32, #tpu.memory_space<vmem>>, vector<300x1xf32>
    %10 = vector.broadcast %9 : vector<300x1xf32> to vector<300x128xf32>
    %11 = arith.addf %8, %10 : vector<300x128xf32>
    %cst_9 = arith.constant 0.000000e+00 : f32
    %12 = vector.broadcast %cst_9 : f32 to vector<300x128xf32>
    %13 = arith.maximumf %11, %12 : vector<300x128xf32>
    %c0_10 = arith.constant 0 : index
    %c0_11 = arith.constant 0 : index
    %14 = vector.load %arg5[%c0_10, %c0_11] : memref<300x1xf32, #tpu.memory_space<vmem>>, vector<300x1xf32>
    %15 = vector.broadcast %14 : vector<300x1xf32> to vector<300x128xf32>
    %16 = arith.mulf %13, %15 : vector<300x128xf32>
    %cst_12 = arith.constant dense<0.000000e+00> : vector<128xf32>
    %17 = vector.multi_reduction <add>, %16, %cst_12 [0] : vector<300x128xf32> to vector<128xf32>
    %18 = vector.shape_cast %17 : vector<128xf32> to vector<1x128xf32>
    %c0_13 = arith.constant 0 : index
    %c0_14 = arith.constant 0 : index
    %19 = vector.load %arg6[%c0_13, %c0_14] : memref<1x1xf32, #tpu.memory_space<vmem>>, vector<1x1xf32>
    %20 = vector.broadcast %19 : vector<1x1xf32> to vector<1x128xf32>
    %21 = arith.addf %18, %20 : vector<1x128xf32>
    %22 = math.tanh %21 : vector<1x128xf32>
    %c0_15 = arith.constant 0 : index
    %c0_16 = arith.constant 0 : index
    %23 = vector.load %arg7[%c0_15, %c0_16] : memref<1x128xf32, #tpu.memory_space<vmem>>, vector<1x128xf32>
    tpu.vector_store %arg7[%c0_15, %c0_16], %22 {strides = array<i32>} : memref<1x128xf32, #tpu.memory_space<vmem>>, vector<1x128xf32>,
    return
  }
  func.func @transform_0(%arg0: i32) -> (i32, i32) {
    %c0_i32 = arith.constant 0 : i32
    %c0_i32_0 = arith.constant 0 : i32
    return %arg0, %c0_i32 : i32, i32
  }
  func.func @transform_1(%arg0: i32) -> (i32, i32) {
    %c0_i32 = arith.constant 0 : i32
    %c0_i32_0 = arith.constant 0 : i32
    %c0_i32_1 = arith.constant 0 : i32
    return %c0_i32, %c0_i32_0 : i32, i32
  }
  func.func @transform_2(%arg0: i32) -> (i32, i32) {
    %c0_i32 = arith.constant 0 : i32
    %c0_i32_0 = arith.constant 0 : i32
    %c0_i32_1 = arith.constant 0 : i32
    return %c0_i32, %c0_i32_0 : i32, i32
  }
  func.func @transform_3(%arg0: i32) -> (i32, i32) {
    %c0_i32 = arith.constant 0 : i32
    %c0_i32_0 = arith.constant 0 : i32
    %c0_i32_1 = arith.constant 0 : i32
    return %c0_i32, %c0_i32_0 : i32, i32
  }
  func.func @transform_4(%arg0: i32) -> (i32, i32) {
    %c0_i32 = arith.constant 0 : i32
    %c0_i32_0 = arith.constant 0 : i32
    %c0_i32_1 = arith.constant 0 : i32
    return %c0_i32, %c0_i32_0 : i32, i32
  }
  func.func @transform_5(%arg0: i32) -> (i32, i32) {
    %c0_i32 = arith.constant 0 : i32
    %c0_i32_0 = arith.constant 0 : i32
    %c0_i32_1 = arith.constant 0 : i32
    return %c0_i32, %c0_i32_0 : i32, i32
  }
  func.func @transform_6(%arg0: i32) -> (i32, i32) {
    %c0_i32 = arith.constant 0 : i32
    %c0_i32_0 = arith.constant 0 : i32
    return %c0_i32, %arg0 : i32, i32
  }
}

</mosaic_0001>

<bundles_post_ra>
// kernel: tpu_custom_call.1
= control target key start
LH: loop header
LB: loop body
LE: loop exit
PB: predicated region body
PF: predicated region fallthrough
CT: control target
= control target key end

     0   :  { %s3682_s0 = inlined_call_operand.vmem [shape: f32[128,12], index: 0, kind: input, shape index: {}]   ;;  %s3683_s1 = inlined_call_operand.vmem [shape: bf16[400,12], index: 1, kind: input, shape index: {}]   ;;  %s3684_s2 = inlined_call_operand.vmem [shape: bf16[300,400], index: 2, kind: input, shape index: {}]   ;;  %s3685_s3 = inlined_call_operand.vmem [shape: f32[300,1], index: 3, kind: input, shape index: {}]   ;;  %s3686_s4 = inlined_call_operand.vmem [shape: f32[300,1], index: 4, kind: input, shape index: {}]   ;;  %s3687_s5 = inlined_call_operand.<no memory space> [shape: f32[1,1], index: 5, kind: input, shape index: {}]   ;;  %s3688_s6 = inlined_call_operand.hbm [shape: f32[1,128], index: 6, kind: output, shape index: {}]  }
   0x1   :  { %v11_v0 = vstv %s3687_s5 }
   0x2   :  { %12 = vst [vmem:[#allocation2] sm:$0x1] %v11_v0 }
   0x3   :  { %v41_v1 = vld [vmem:[%s3682_s0 + $0x70] sm:$0xff]  ;;  %v42_v2 = vld [vmem:[%s3682_s0 + $0x78] sm:$0xff]  ;;  %vm226_vm0 = vcmask 97280   ;;  %v2598_v3 = vmov 0.0   ;;  %v39_v5 = vld [vmem:[%s3682_s0 + $0x60] sm:$0xff]  ;;  %vm2599_vm1 = vmmov 0  }
   0x4   :  { %2281 = vmatprep.subr.bf16.mxu0 %v2598_v3  ;;  %v50_v4 = vpack.c.bf16 %v42_v2, %v41_v1  ;;  %v40_v6 = vld [vmem:[%s3682_s0 + $0x68] sm:$0xff]  ;;  %2297 = vmatprep.mubr.msk.bf16.mxu0 %vm2599_vm1, %v2598_v3  ;;  %v37_v9 = vld [vmem:[%s3682_s0 + $0x50] sm:$0xff]  ;;  %v38_v11 = vld [vmem:[%s3682_s0 + $0x58] sm:$0xff] }
   0x5   :  { %v49_v8 = vpack.c.bf16 %v40_v6, %v39_v5  ;;  %v48_v12 = vpack.c.bf16 %v38_v11, %v37_v9  ;;  %v35_v13 = vld [vmem:[%s3682_s0 + $0x40] sm:$0xff]  ;;  %v36_v14 = vld [vmem:[%s3682_s0 + $0x48] sm:$0xff]  ;;  %v33_v18 = vld [vmem:[%s3682_s0 + $0x30] sm:$0xff] }
   0x6   :  { %v324_v7 = vsel %vm226_vm0, %v50_v4, 0  ;;  %v47_v16 = vpack.c.bf16 %v36_v14, %v35_v13  ;;  %v34_v19 = vld [vmem:[%s3682_s0 + $0x38] sm:$0xff]  ;;  %v31_v21 = vld [vmem:[%s3682_s0 + $0x20] sm:$0xff]  ;;  %v32_v22 = vld [vmem:[%s3682_s0 + $0x28] sm:$0xff] }
   0x7   :  { %2282 = vmatpush3.bf16.xpose.msra.mxu0 %v324_v7  ;;  %v321_v10 = vsel %vm226_vm0, %v49_v8, 0  ;;  %v318_v15 = vsel %vm226_vm0, %v48_v12, 0  ;;  %v46_v20 = vpack.c.bf16 %v34_v19, %v33_v18  ;;  %v45_v24 = vpack.c.bf16 %v32_v22, %v31_v21  ;;  %v29_v25 = vld [vmem:[%s3682_s0 + $0x10] sm:$0xff]  ;;  %v30_v26 = vld [vmem:[%s3682_s0 + $0x18] sm:$0xff]  ;;  %v27_v29 = vld [vmem:[%s3682_s0] sm:$0xff] }
   0x8   :  { %2283 = vmatprep.subr.bf16.mxu0 %v2598_v3  ;;  %v315_v17 = vsel %vm226_vm0, %v47_v16, 0  ;;  %v44_v28 = vpack.c.bf16 %v30_v26, %v29_v25  ;;  %v28_v30 = vld [vmem:[%s3682_s0 + $0x8] sm:$0xff] }
   0x9   :  { %v312_v23 = vsel %vm226_vm0, %v46_v20, 0  ;;  %v309_v27 = vsel %vm226_vm0, %v45_v24, 0 }
   0xa   :  { %v306_v31 = vsel %vm226_vm0, %v44_v28, 0 }
   0xf   :  { %2284 = vmatpush3.bf16.xpose.msra.mxu0 %v321_v10 }
  0x10   :  { %2285 = vmatprep.subr.bf16.mxu0 %v2598_v3 }
  0x17   :  { %2286 = vmatpush3.bf16.xpose.msra.mxu0 %v318_v15 }
  0x18   :  { %2287 = vmatprep.subr.bf16.mxu0 %v2598_v3 }
  0x1f   :  { %2288 = vmatpush3.bf16.xpose.msra.mxu0 %v315_v17 }
  0x20   :  { %2289 = vmatprep.subr.bf16.mxu0 %v2598_v3 }
  0x27   :  { %2290 = vmatpush3.bf16.xpose.msra.mxu0 %v312_v23 }
  0x28   :  { %2291 = vmatprep.subr.bf16.mxu0 %v2598_v3 }
  0x2f   :  { %2292 = vmatpush3.bf16.xpose.msra.mxu0 %v309_v27 }
  0x30   :  { %2293 = vmatprep.subr.bf16.mxu0 %v2598_v3 }
  0x37   :  { %2294 = vmatpush3.bf16.xpose.msra.mxu0 %v306_v31 }
  0x38   :  { %13 = vsyncpa [#allocation4], 0  ;;  %2295 = vmatprep.subr.bf16.mxu0 %v2598_v3  ;;  %v43_v32 = vpack.c.bf16 %v28_v30, %v27_v29  ;;  %v2435_v34 = vld [vmem:[%s3683_s1] sm:$0xff]   ;;  %v2436_v35 = vld [vmem:[%s3683_s1 + $0x8] sm:$0xff]   ;;  %v2600_v51 = vmov 0   ;;  %vm1299_vm2 = vcmask 130048  }
  0x39   :  { %v2437_v36 = vld [vmem:[%s3683_s1 + $0x10] sm:$0xff]   ;;  %v2438_v37 = vld [vmem:[%s3683_s1 + $0x18] sm:$0xff]   ;;  %v2439_v38 = vld [vmem:[%s3683_s1 + $0x20] sm:$0xff]   ;;  %2397 = vmatprep.subr.bf16.mxu1 %v2600_v51  ;;  %2433 = vset.pattern.permute.xlu0 %v2600_v51  ;;  %vm2067_vm3 = vcmask 1043456  }
  0x3a   :  { %v303_v33 = vsel %vm226_vm0, %v43_v32, 0  ;;  %v2440_v39 = vld [vmem:[%s3683_s1 + $0x28] sm:$0xff]   ;;  %v2441_v40 = vld [vmem:[%s3683_s1 + $0x30] sm:$0xff]   ;;  %v2442_v41 = vld [vmem:[%s3683_s1 + $0x38] sm:$0xff]   ;;  %2434 = vset.pattern.permute.xlu1 %v2600_v51 }
  0x3b   :  { %v2443_v42 = vld [vmem:[%s3683_s1 + $0x40] sm:$0xff]   ;;  %v2444_v43 = vld [vmem:[%s3683_s1 + $0x48] sm:$0xff]   ;;  %v2445_v44 = vld [vmem:[%s3683_s1 + $0x50] sm:$0xff]  }
  0x3c   :  { %v2446_v45 = vld [vmem:[%s3683_s1 + $0x58] sm:$0xff]   ;;  %v2447_v46 = vld [vmem:[%s3683_s1 + $0x60] sm:$0xff]   ;;  %v2448_v47 = vld [vmem:[%s3683_s1 + $0x68] sm:$0xff]  }
  0x3d   :  { %v2449_v48 = vld [vmem:[%s3683_s1 + $0x70] sm:$0xff]   ;;  %v2450_v49 = vld [vmem:[%s3683_s1 + $0x78] sm:$0xff]   ;;  %v2451_v50 = vld [vmem:[%s3683_s1 + $0x80] sm:$0xff]  }
  0x3e   :  { %v2452_v52 = vld [vmem:[%s3683_s1 + $0x88] sm:$0xff]   ;;  %v2453_v53 = vld [vmem:[%s3683_s1 + $0x90] sm:$0xff]   ;;  %v2454_v54 = vld [vmem:[%s3683_s1 + $0x98] sm:$0xff]  }
  0x3f   :  { %2296 = vmatpush3.bf16.xpose.msra.mxu0 %v303_v33  ;;  %v2455_v55 = vld [vmem:[%s3683_s1 + $0xa0] sm:$0xff]   ;;  %v2456_v56 = vld [vmem:[%s3683_s1 + $0xa8] sm:$0xff]   ;;  %v2457_v57 = vld [vmem:[%s3683_s1 + $0xb0] sm:$0xff]  }
  0x40   :  { %1357 = vmatprep.subr.bf16.mxu0 %v2600_v51  ;;  %v2458_v58 = vld [vmem:[%s3683_s1 + $0xb8] sm:$0xff]   ;;  %v2459_v59 = vld [vmem:[%s3683_s1 + $0xc0] sm:$0xff]  }
  0x41   :  { %v2462_v17 = vld [vmem:[%s3684_s2 + $0xc4] ss:$16 sps:$4 sm:$0xff]  }
  0x42   :  { %1437 = vmatprep.mubr.bf16.mxu1 %v2462_v17  ;;  %v710_v31 = vld [vmem:[%s3685_s3] sm:$0xff] }
  0x43   :  { %750 = vperm.xlu0 %2433, %v710_v31   ;;  %v727_v31 = vld [vmem:[%s3685_s3 + $0x88] sm:$0xff] }
  0x46   :  { %2298 = vmatmul.mubr.msk.bf16.vlgmr.msra.gmra.mxu0 %vm226_vm0, %v2435_v34  ;;  %v711_v34 = vld [vmem:[%s3685_s3 + $0x8] sm:$0xff] }
  0x47   :  { %2301 = vmatprep.mubr.msk.bf16.mxu0 %vm2599_vm1, %v2598_v3  ;;  %755 = vperm.xlu0 %2433, %v711_v34  }
  0x4e   :  { %2302 = vmatmul.mubr.msk.bf16.gmra.mxu0 %vm226_vm0, %v2436_v35 }
  0x4f   :  { %2305 = vmatprep.mubr.msk.bf16.mxu0 %vm2599_vm1, %v2598_v3 }
  0x56   :  { %2306 = vmatmul.mubr.msk.bf16.gmra.mxu0 %vm226_vm0, %v2437_v36  ;;  %v712_v36 = vld [vmem:[%s3685_s3 + $0x10] sm:$0xff] }
  0x57   :  { %2309 = vmatprep.mubr.msk.bf16.mxu0 %vm2599_vm1, %v2598_v3  ;;  %760 = vperm.xlu1 %2434, %v712_v36   ;;  %v732_v36 = vld [vmem:[%s3685_s3 + $0xb0] sm:$0xff] }
  0x5e   :  { %2310 = vmatmul.mubr.msk.bf16.gmra.mxu0 %vm226_vm0, %v2438_v37 }
  0x5f   :  { %2313 = vmatprep.mubr.msk.bf16.mxu0 %vm2599_vm1, %v2598_v3 }
  0x66   :  { %2314 = vmatmul.mubr.msk.bf16.gmra.mxu0 %vm226_vm0, %v2439_v38 }
  0x67   :  { %2317 = vmatprep.mubr.msk.bf16.mxu0 %vm2599_vm1, %v2598_v3 }
  0x6e   :  { %2318 = vmatmul.mubr.msk.bf16.gmra.mxu0 %vm226_vm0, %v2440_v39 }
  0x6f   :  { %2321 = vmatprep.mubr.msk.bf16.mxu0 %vm2599_vm1, %v2598_v3 }
  0x76   :  { %2322 = vmatmul.mubr.msk.bf16.gmra.mxu0 %vm226_vm0, %v2441_v40 }
  0x77   :  { %2325 = vmatprep.mubr.msk.bf16.mxu0 %vm2599_vm1, %v2598_v3 }
  0x7e   :  { %2326 = vmatmul.mubr.msk.bf16.gmra.mxu0 %vm226_vm0, %v2442_v41 }
  0x7f   :  { %2329 = vmatprep.mubr.msk.bf16.mxu0 %vm2599_vm1, %v2598_v3 }
  0x86   :  { %2330 = vmatmul.mubr.msk.bf16.gmra.mxu0 %vm226_vm0, %v2443_v42  ;;  %v714_v42 = vld [vmem:[%s3685_s3 + $0x20] sm:$0xff] }
  0x87   :  { %2333 = vmatprep.mubr.msk.bf16.mxu0 %vm2599_vm1, %v2598_v3  ;;  %770 = vperm.xlu0 %2433, %v714_v42   ;;  %v733_v42 = vld [vmem:[%s3685_s3 + $0xb8] sm:$0xff] }
  0x8e   :  { %2334 = vmatmul.mubr.msk.bf16.gmra.mxu0 %vm226_vm0, %v2444_v43 }
  0x8f   :  { %2337 = vmatprep.mubr.msk.bf16.mxu0 %vm2599_vm1, %v2598_v3 }
  0x96   :  { %2338 = vmatmul.mubr.msk.bf16.gmra.mxu0 %vm226_vm0, %v2445_v44  ;;  %v713_v44 = vld [vmem:[%s3685_s3 + $0x18] sm:$0xff] }
  0x97   :  { %2341 = vmatprep.mubr.msk.bf16.mxu0 %vm2599_vm1, %v2598_v3  ;;  %765 = vperm.xlu1 %2434, %v713_v44   ;;  %v736_v44 = vld [vmem:[%s3685_s3 + $0xd0] sm:$0xff] }
  0x9e   :  { %2342 = vmatmul.mubr.msk.bf16.gmra.mxu0 %vm226_vm0, %v2446_v45 }
  0x9f   :  { %2345 = vmatprep.mubr.msk.bf16.mxu0 %vm2599_vm1, %v2598_v3 }
  0xa6   :  { %2346 = vmatmul.mubr.msk.bf16.gmra.mxu0 %vm226_vm0, %v2447_v46 }
  0xa7   :  { %2349 = vmatprep.mubr.msk.bf16.mxu0 %vm2599_vm1, %v2598_v3 }
  0xae   :  { %2350 = vmatmul.mubr.msk.bf16.gmra.mxu0 %vm226_vm0, %v2448_v47 }
  0xaf   :  { %2353 = vmatprep.mubr.msk.bf16.mxu0 %vm2599_vm1, %v2598_v3 }
  0xb6   :  { %2354 = vmatmul.mubr.msk.bf16.gmra.mxu0 %vm226_vm0, %v2449_v48 }
  0xb7   :  { %2357 = vmatprep.mubr.msk.bf16.mxu0 %vm2599_vm1, %v2598_v3 }
  0xbe   :  { %2358 = vmatmul.mubr.msk.bf16.gmra.mxu0 %vm226_vm0, %v2450_v49  ;;  %v716_v49 = vld [vmem:[%s3685_s3 + $0x30] sm:$0xff] }
  0xbf   :  { %2361 = vmatprep.mubr.msk.bf16.mxu0 %vm2599_vm1, %v2598_v3  ;;  %780 = vperm.xlu0 %2433, %v716_v49  }
  0xc6   :  { %2362 = vmatmul.mubr.msk.bf16.gmra.mxu0 %vm226_vm0, %v2451_v50 }
  0xc7   :  { %2365 = vmatprep.mubr.msk.bf16.mxu0 %vm2599_vm1, %v2598_v3 }
  0xce   :  { %2366 = vmatmul.mubr.msk.bf16.gmra.mxu0 %vm226_vm0, %v2452_v52  ;;  %v715_v52 = vld [vmem:[%s3685_s3 + $0x28] sm:$0xff] }
  0xcf   :  { %2369 = vmatprep.mubr.msk.bf16.mxu0 %vm2599_vm1, %v2598_v3  ;;  %775 = vperm.xlu1 %2434, %v715_v52  }
  0xd6   :  { %2370 = vmatmul.mubr.msk.bf16.gmra.mxu0 %vm226_vm0, %v2453_v53 }
  0xd7   :  { %2373 = vmatprep.mubr.msk.bf16.mxu0 %vm2599_vm1, %v2598_v3 }
  0xde   :  { %2374 = vmatmul.mubr.msk.bf16.gmra.mxu0 %vm226_vm0, %v2454_v54 }
  0xdf   :  { %2377 = vmatprep.mubr.msk.bf16.mxu0 %vm2599_vm1, %v2598_v3 }
  0xe6   :  { %2378 = vmatmul.mubr.msk.bf16.gmra.mxu0 %vm226_vm0, %v2455_v55 }
  0xe7   :  { %2381 = vmatprep.mubr.msk.bf16.mxu0 %vm2599_vm1, %v2598_v3 }
  0xee   :  { %2382 = vmatmul.mubr.msk.bf16.gmra.mxu0 %vm226_vm0, %v2456_v56 }
  0xef   :  { %2385 = vmatprep.mubr.msk.bf16.mxu0 %vm2599_vm1, %v2598_v3 }
  0xf6   :  { %2386 = vmatmul.mubr.msk.bf16.gmra.mxu0 %vm226_vm0, %v2457_v57 }
  0xf7   :  { %2389 = vmatprep.mubr.msk.bf16.mxu0 %vm2599_vm1, %v2598_v3 }
  0xfe   :  { %2390 = vmatmul.mubr.msk.bf16.gmra.mxu0 %vm226_vm0, %v2458_v58 }
  0xff   :  { %2393 = vmatprep.mubr.msk.bf16.mxu0 %vm2599_vm1, %v2598_v3 }
 0x106   :  { %v360_v60 = vpop.f32.mrf.mxu0  ;;  %2394 = vmatmul.mubr.msk.bf16.gmra.mxu0 %vm226_vm0, %v2459_v59 }
 0x107   :  { %v559_v63 = vmax.f32 %v360_v60, 0.0  ;;  %v718_v60 = vld [vmem:[%s3685_s3 + $0x40] sm:$0xff] }
 0x108   :  { %v2299_v61 = vpop.f32.mrf.mxu0  ;;  %790 = vperm.xlu0 %2433, %v718_v60   ;;  %v741_v60 = vld [vmem:[%s3685_s3 + $0xf8] sm:$0xff] }
 0x10a   :  { %v363_v62 = vpop.f32.mrf.mxu0 }
 0x10b   :  { %v560_v0 = vmax.f32 %v363_v62, 0.0  ;;  %v717_v62 = vld [vmem:[%s3685_s3 + $0x38] sm:$0xff] }
 0x10c   :  { %v2300_v1 = vpop.f32.mrf.mxu0  ;;  %785 = vperm.xlu1 %2434, %v717_v62   ;;  %v744_v62 = vld [vmem:[%s3685_s3 + $0x110] sm:$0xff] }
 0x10d   :  { %v2858_v2 = vpack.c.bf16 %v560_v0, %v559_v63 }
 0x10e   :  { %v368_v4 = vpop.f32.mrf.mxu0 }
 0x10f   :  { %v561_v7 = vmax.f32 %v368_v4, 0.0 }
 0x110   :  { %v2303_v5 = vpop.f32.mrf.mxu0 }
 0x111   :  { %v720_v5 = vld [vmem:[%s3685_s3 + $0x50] sm:$0xff] }
 0x112   :  { %v371_v6 = vpop.f32.mrf.mxu0  ;;  %800 = vperm.xlu0 %2433, %v720_v5  }
 0x113   :  { %v562_v8 = vmax.f32 %v371_v6, 0.0 }
 0x114   :  { %v2304_v3 = vpop.f32.mrf.mxu0 }
 0x115   :  { %v2860_v9 = vpack.c.bf16 %v562_v8, %v561_v7  ;;  %v719_v7 = vld [vmem:[%s3685_s3 + $0x48] sm:$0xff] }
 0x116   :  { %v2862_v10 = vpop.f32.mrf.mxu0  ;;  %795 = vperm.xlu1 %2434, %v719_v7  }
 0x118   :  { %v2307_v11 = vpop.f32.mrf.mxu0 }
 0x11a   :  { %v2864_v12 = vpop.f32.mrf.mxu0 }
 0x11c   :  { %v2308_v13 = vpop.f32.mrf.mxu0 }
 0x11e   :  { %v2866_v14 = vpop.f32.mrf.mxu0 }
 0x11f   :  { %v565_v8 = vmax.f32 %v2866_v14, 0.0 }
 0x120   :  { %v2311_v15 = vpop.f32.mrf.mxu0 }
 0x121   :  { %v564_v15 = vmax.f32 %v2864_v12, 0.0 }
 0x122   :  { %v2868_v16 = vpop.f32.mrf.mxu0 }
 0x123   :  { %v566_v1 = vmax.f32 %v2868_v16, 0.0 }
 0x124   :  { %v2312_v18 = vpop.f32.mrf.mxu0 }
 0x125   :  { %v688_v16 = vpack.c.bf16 %v566_v1, %v565_v8  ;;  %v722_v18 = vld [vmem:[%s3685_s3 + $0x60] sm:$0xff]  ;;  %v1766_v8 = vld [vmem:[%s3686_s4 + $0x8] sm:$0xff] }
 0x126   :  { %v2873_v19 = vpop.f32.mrf.mxu0  ;;  %810 = vperm.xlu0 %2433, %v722_v18  }
 0x127   :  { %v567_v63 = vmax.f32 %v2873_v19, 0.0  ;;  %v721_v19 = vld [vmem:[%s3685_s3 + $0x58] sm:$0xff] }
 0x128   :  { %v2315_v20 = vpop.f32.mrf.mxu0  ;;  %805 = vperm.xlu1 %2434, %v721_v19  }
 0x129   :  { %v563_v20 = vmax.f32 %v2862_v10, 0.0 }
 0x12a   :  { %v2875_v21 = vpop.f32.mrf.mxu0 }
 0x12b   :  { %v568_v57 = vmax.f32 %v2875_v21, 0.0  ;;  %v687_v21 = vpack.c.bf16 %v564_v15, %v563_v20  ;;  %v1768_v20 = vld [vmem:[%s3686_s4 + $0x18] sm:$0xff] }
 0x12c   :  { %v2316_v22 = vpop.f32.mrf.mxu0 }
 0x12d   :  { %v689_v4 = vpack.c.bf16 %v568_v57, %v567_v63  ;;  %v724_v22 = vld [vmem:[%s3685_s3 + $0x70] sm:$0xff]  ;;  %v742_v57 = vld [vmem:[%s3685_s3 + $0x100] sm:$0xff] }
 0x12e   :  { %v400_v23 = vpop.f32.mrf.mxu0  ;;  %820 = vperm.xlu0 %2433, %v724_v22  }
 0x12f   :  { %v569_v53 = vmax.f32 %v400_v23, 0.0 }
 0x130   :  { %v2319_v24 = vpop.f32.mrf.mxu0 }
 0x131   :  { %v723_v24 = vld [vmem:[%s3685_s3 + $0x68] sm:$0xff] }
 0x132   :  { %v403_v25 = vpop.f32.mrf.mxu0  ;;  %815 = vperm.xlu1 %2434, %v723_v24  }
 0x133   :  { %v570_v47 = vmax.f32 %v403_v25, 0.0  ;;  %v726_v25 = vld [vmem:[%s3685_s3 + $0x80] sm:$0xff] }
 0x134   :  { %v2320_v26 = vpop.f32.mrf.mxu0  ;;  %830 = vperm.xlu0 %2433, %v726_v25  }
 0x135   :  { %v690_v58 = vpack.c.bf16 %v570_v47, %v569_v53  ;;  %v740_v53 = vld [vmem:[%s3685_s3 + $0xf0] sm:$0xff] }
 0x136   :  { %v408_v27 = vpop.f32.mrf.mxu0 }
 0x137   :  { %v571_v45 = vmax.f32 %v408_v27, 0.0  ;;  %v725_v27 = vld [vmem:[%s3685_s3 + $0x78] sm:$0xff] }
 0x138   :  { %v2323_v28 = vpop.f32.mrf.mxu0  ;;  %825 = vperm.xlu1 %2434, %v725_v27  }
 0x13a   :  { %v411_v29 = vpop.f32.mrf.mxu0 }
 0x13b   :  { %v572_v40 = vmax.f32 %v411_v29, 0.0  ;;  %v728_v29 = vld [vmem:[%s3685_s3 + $0x90] sm:$0xff] }
 0x13c   :  { %v2324_v30 = vpop.f32.mrf.mxu0  ;;  %840 = vperm.xlu0 %2433, %v728_v29   ;;  %835 = vperm.xlu1 %2434, %v727_v31   ;;  %v1770_v29 = vld [vmem:[%s3686_s4 + $0x28] sm:$0xff] }
 0x13d   :  { %v691_v48 = vpack.c.bf16 %v572_v40, %v571_v45  ;;  %v734_v40 = vld [vmem:[%s3685_s3 + $0xc0] sm:$0xff] }
 0x13e   :  { %v416_v32 = vpop.f32.mrf.mxu0 }
 0x13f   :  { %v573_v37 = vmax.f32 %v416_v32, 0.0  ;;  %v2500_v32 = vld [vmem:[%s3684_s2 + $0x4] ss:$16 sps:$4 sm:$0xff]  }
 0x140   :  { %v2327_v33 = vpop.f32.mrf.mxu0  ;;  %1389 = vmatprep.mubr.bf16.mxu0 %v2500_v32 }
 0x141   :  { %v730_v33 = vld [vmem:[%s3685_s3 + $0xa0] sm:$0xff] }
 0x142   :  { %v419_v35 = vpop.f32.mrf.mxu0  ;;  %850 = vperm.xlu0 %2433, %v730_v33  }
 0x143   :  { %v574_v38 = vmax.f32 %v419_v35, 0.0 }
 0x144   :  { %v2328_v39 = vpop.f32.mrf.mxu0 }
 0x145   :  { %v692_v41 = vpack.c.bf16 %v574_v38, %v573_v37  ;;  %v731_v38 = vld [vmem:[%s3685_s3 + $0xa8] sm:$0xff] }
 0x146   :  { %v424_v43 = vpop.f32.mrf.mxu0  ;;  %860 = vperm.xlu0 %2433, %v732_v36  }
 0x147   :  { %1358 = vmatpush1.bf16.msra.mxu0 %v692_v41  ;;  %2413 = vmatpush1.bf16.msra.mxu1 %v692_v41  ;;  %v575_v54 = vmax.f32 %v424_v43, 0.0 }
 0x148   :  { %v2331_v46 = vpop.f32.mrf.mxu0  ;;  %1359 = vmatprep.subr.bf16.mxu0 %v2600_v51  ;;  %2398 = vmatprep.subr.bf16.mxu1 %v2600_v51 }
 0x149   :  { %v735_v46 = vld [vmem:[%s3685_s3 + $0xc8] sm:$0xff] }
 0x14a   :  { %v427_v50 = vpop.f32.mrf.mxu0  ;;  %870 = vperm.xlu0 %2433, %v734_v40  }
 0x14b   :  { %v576_v55 = vmax.f32 %v427_v50, 0.0  ;;  %1360 = vmatpush1.bf16.msra.mxu0 %v691_v48  ;;  %2414 = vmatpush1.bf16.msra.mxu1 %v691_v48  ;;  %v738_v48 = vld [vmem:[%s3685_s3 + $0xe0] sm:$0xff]  ;;  %v737_v50 = vld [vmem:[%s3685_s3 + $0xd8] sm:$0xff] }
 0x14c   :  { %v2332_v56 = vpop.f32.mrf.mxu0  ;;  %1361 = vmatprep.subr.bf16.mxu0 %v2600_v51  ;;  %2399 = vmatprep.subr.bf16.mxu1 %v2600_v51 }
 0x14d   :  { %v2903_v59 = vpack.c.bf16 %v576_v55, %v575_v54  ;;  %v739_v55 = vld [vmem:[%s3685_s3 + $0xe8] sm:$0xff] }
 0x14e   :  { %v432_v61 = vpop.f32.mrf.mxu0  ;;  %880 = vperm.xlu0 %2433, %v736_v44   ;;  %v1774_v44 = vld [vmem:[%s3686_s4 + $0x48] sm:$0xff] }
 0x14f   :  { %1362 = vmatpush1.bf16.msra.mxu0 %v690_v58  ;;  %2415 = vmatpush1.bf16.msra.mxu1 %v690_v58  ;;  %v577_v3 = vmax.f32 %v432_v61, 0.0 }
 0x150   :  { %v2335_v0 = vpop.f32.mrf.mxu0  ;;  %1363 = vmatprep.subr.bf16.mxu0 %v2600_v51  ;;  %2400 = vmatprep.subr.bf16.mxu1 %v2600_v51 }
 0x151   :  { %v743_v0 = vld [vmem:[%s3685_s3 + $0x108] sm:$0xff] }
 0x152   :  { %v435_v6 = vpop.f32.mrf.mxu0  ;;  %890 = vperm.xlu0 %2433, %v738_v48   ;;  %v1776_v48 = vld [vmem:[%s3686_s4 + $0x58] sm:$0xff] }
 0x153   :  { %v578_v11 = vmax.f32 %v435_v6, 0.0  ;;  %1364 = vmatpush1.bf16.msra.mxu0 %v689_v4  ;;  %2416 = vmatpush1.bf16.msra.mxu1 %v689_v4 }
 0x154   :  { %v2336_v13 = vpop.f32.mrf.mxu0  ;;  %1365 = vmatprep.subr.bf16.mxu0 %v2600_v51  ;;  %2401 = vmatprep.subr.bf16.mxu1 %v2600_v51 }
 0x155   :  { %v2925_v17 = vpack.c.bf16 %v578_v11, %v577_v3  ;;  %v1765_v11 = vld [vmem:[%s3686_s4] sm:$0xff] }
 0x156   :  { %v2930_v14 = vpop.f32.mrf.mxu0  ;;  %900 = vperm.xlu0 %2433, %v740_v53  }
 0x157   :  { %1366 = vmatpush1.bf16.msra.mxu0 %v688_v16  ;;  %2417 = vmatpush1.bf16.msra.mxu1 %v688_v16 }
 0x158   :  { %v2339_v12 = vpop.f32.mrf.mxu0  ;;  %1367 = vmatprep.subr.bf16.mxu0 %v2600_v51  ;;  %2402 = vmatprep.subr.bf16.mxu1 %v2600_v51 }
 0x15a   :  { %v2941_v23 = vpop.f32.mrf.mxu0  ;;  %910 = vperm.xlu0 %2433, %v742_v57  }
 0x15b   :  { %1368 = vmatpush1.bf16.msra.mxu0 %v687_v21  ;;  %2418 = vmatpush1.bf16.msra.mxu1 %v687_v21  ;;  %v1767_v21 = vld [vmem:[%s3686_s4 + $0x10] sm:$0xff] }
 0x15c   :  { %v2340_v10 = vpop.f32.mrf.mxu0  ;;  %1369 = vmatprep.subr.bf16.mxu0 %v2600_v51  ;;  %2403 = vmatprep.subr.bf16.mxu1 %v2600_v51 }
 0x15e   :  { %v2951_v26 = vpop.f32.mrf.mxu0  ;;  %920 = vperm.xlu0 %2433, %v744_v62   ;;  %v2505_v62 = vld [vmem:[%s3684_s2 + $0x24] ss:$16 sps:$4 sm:$0xff]  }
 0x15f   :  { %1370 = vmatpush1.bf16.msra.mxu0 %v2860_v9  ;;  %2419 = vmatpush1.bf16.msra.mxu1 %v2860_v9 }
 0x160   :  { %v2343_v28 = vpop.f32.mrf.mxu0  ;;  %1371 = vmatprep.subr.bf16.mxu0 %v2600_v51  ;;  %2404 = vmatprep.subr.bf16.mxu1 %v2600_v51 }
 0x162   :  { %v2963_v30 = vpop.f32.mrf.mxu0  ;;  %1810 = vperm.xlu0 %2433, %v1766_v8   ;;  %v2507_v8 = vld [vmem:[%s3684_s2 + $0x20] ss:$16 sps:$4 sm:$0xff]  }
 0x163   :  { %1372 = vmatpush1.bf16.msra.mxu0 %v2858_v2  ;;  %2420 = vmatpush1.bf16.msra.mxu1 %v2858_v2  ;;  %v729_v2 = vld [vmem:[%s3685_s3 + $0x98] sm:$0xff] }
 0x164   :  { %v2344_v9 = vpop.f32.mrf.mxu0  ;;  %1373 = vmatprep.subr.bf16.mxu0 %v2600_v51  ;;  %2405 = vmatprep.subr.bf16.mxu1 %v2600_v51 }
 0x165   :  { %845 = vperm.xlu1 %2434, %v729_v2   ;;  %v1769_v9 = vld [vmem:[%s3686_s4 + $0x20] sm:$0xff]  ;;  %v582_v2 = vmax.f32 %v2963_v30, 0.0  ;;  %v580_v30 = vmax.f32 %v2941_v23, 0.0 }
 0x166   :  { %v2978_v34 = vpop.f32.mrf.mxu0  ;;  %1820 = vperm.xlu0 %2433, %v1768_v20  }
 0x167   :  { %v583_v32 = vmax.f32 %v2978_v34, 0.0  ;;  %v1771_v34 = vld [vmem:[%s3686_s4 + $0x30] sm:$0xff] }
 0x168   :  { %v2347_v35 = vpop.f32.mrf.mxu0 }
 0x169   :  { %855 = vperm.xlu1 %2434, %v731_v38  }
 0x16a   :  { %v2986_v37 = vpop.f32.mrf.mxu0  ;;  %1830 = vperm.xlu0 %2433, %v1770_v29  }
 0x16b   :  { %v584_v25 = vmax.f32 %v2986_v37, 0.0  ;;  %v1772_v37 = vld [vmem:[%s3686_s4 + $0x38] sm:$0xff] }
 0x16c   :  { %v2348_v39 = vpop.f32.mrf.mxu0 }
 0x16d   :  { %865 = vperm.xlu1 %2434, %v733_v42   ;;  %v697_v35 = vpack.c.bf16 %v584_v25, %v583_v32  ;;  %v581_v39 = vmax.f32 %v2951_v26, 0.0  ;;  %v1773_v26 = vld [vmem:[%s3686_s4 + $0x40] sm:$0xff] }
 0x16e   :  { %v2994_v41 = vpop.f32.mrf.mxu0  ;;  %1840 = vperm.xlu0 %2433, %v1772_v37   ;;  %v2469_v25 = vld [vmem:[%s3684_s2 + $0x124] ss:$16 sps:$4 sm:$0xff]   ;;  %v2516_v37 = vld [vmem:[%s3684_s2 + $0x60] ss:$16 sps:$4 sm:$0xff]  }
 0x16f   :  { %v585_v22 = vmax.f32 %v2994_v41, 0.0  ;;  %v696_v42 = vpack.c.bf16 %v582_v2, %v581_v39  ;;  %v1789_v32 = vld [vmem:[%s3686_s4 + $0xc0] sm:$0xff]  ;;  %v1792_v2 = vld [vmem:[%s3686_s4 + $0xd8] sm:$0xff] }
 0x170   :  { %v2351_v43 = vpop.f32.mrf.mxu0  ;;  %v2524_v39 = vld [vmem:[%s3684_s2 + $0x84] ss:$16 sps:$4 sm:$0xff]  }
 0x171   :  { %875 = vperm.xlu1 %2434, %v735_v46   ;;  %v579_v46 = vmax.f32 %v2930_v14, 0.0 }
 0x172   :  { %v467_v45 = vpop.f32.mrf.mxu0  ;;  %1850 = vperm.xlu0 %2433, %v1774_v44  }
 0x173   :  { %v586_v16 = vmax.f32 %v467_v45, 0.0 }
 0x174   :  { %v2352_v47 = vpop.f32.mrf.mxu0 }
 0x175   :  { %885 = vperm.xlu1 %2434, %v737_v50   ;;  %v698_v27 = vpack.c.bf16 %v586_v16, %v585_v22  ;;  %v695_v47 = vpack.c.bf16 %v580_v30, %v579_v46  ;;  %v1775_v50 = vld [vmem:[%s3686_s4 + $0x50] sm:$0xff]  ;;  %v1786_v16 = vld [vmem:[%s3686_s4 + $0xa8] sm:$0xff]  ;;  %v1796_v46 = vld [vmem:[%s3686_s4 + $0xf8] sm:$0xff] }
 0x176   :  { %v472_v49 = vpop.f32.mrf.mxu0  ;;  %1860 = vperm.xlu0 %2433, %v1776_v48   ;;  %v2468_v22 = vld [vmem:[%s3684_s2 + $0x100] ss:$16 sps:$4 sm:$0xff]  }
 0x177   :  { %v587_v13 = vmax.f32 %v472_v49, 0.0  ;;  %v2522_v48 = vld [vmem:[%s3684_s2 + $0x80] ss:$16 sps:$4 sm:$0xff]  }
 0x178   :  { %v2355_v52 = vpop.f32.mrf.mxu0 }
 0x179   :  { %895 = vperm.xlu1 %2434, %v739_v55   ;;  %v1778_v52 = vld [vmem:[%s3686_s4 + $0x68] sm:$0xff] }
 0x17a   :  { %v475_v54 = vpop.f32.mrf.mxu0  ;;  %1870 = vperm.xlu0 %2433, %v1778_v52  }
 0x17b   :  { %v588_v6 = vmax.f32 %v475_v54, 0.0  ;;  %v1777_v54 = vld [vmem:[%s3686_s4 + $0x60] sm:$0xff] }
 0x17c   :  { %v2356_v56 = vpop.f32.mrf.mxu0 }
 0x17d   :  { %905 = vperm.xlu1 %2434, %v741_v60   ;;  %v699_v18 = vpack.c.bf16 %v588_v6, %v587_v13  ;;  %v1780_v56 = vld [vmem:[%s3686_s4 + $0x78] sm:$0xff]  ;;  %v1779_v60 = vld [vmem:[%s3686_s4 + $0x70] sm:$0xff] }
 0x17e   :  { %v480_v58 = vpop.f32.mrf.mxu0  ;;  %1880 = vperm.xlu0 %2433, %v1780_v56   ;;  %v2510_v13 = vld [vmem:[%s3684_s2 + $0x44] ss:$16 sps:$4 sm:$0xff]  }
 0x17f   :  { %v589_v1 = vmax.f32 %v480_v58, 0.0  ;;  %v2460_v58 = vld [vmem:[%s3684_s2 + $0xc0] ss:$16 sps:$4 sm:$0xff]  }
 0x180   :  { %v2359_v61 = vpop.f32.mrf.mxu0 }
 0x181   :  { %915 = vperm.xlu1 %2434, %v743_v0   ;;  %v2463_v61 = vld [vmem:[%s3684_s2 + $0xe4] ss:$16 sps:$4 sm:$0xff]   ;;  %v1782_v0 = vld [vmem:[%s3686_s4 + $0x88] sm:$0xff] }
 0x182   :  { %v483_v63 = vpop.f32.mrf.mxu0  ;;  %1890 = vperm.xlu0 %2433, %v1782_v0  }
 0x183   :  { %v590_v4 = vmax.f32 %v483_v63, 0.0 }
 0x184   :  { %v2360_v5 = vpop.f32.mrf.mxu0 }
 0x185   :  { %v700_v7 = vpack.c.bf16 %v590_v4, %v589_v1  ;;  %1805 = vperm.xlu1 %2434, %v1765_v11   ;;  %v1784_v5 = vld [vmem:[%s3686_s4 + $0x98] sm:$0xff]  ;;  %v2466_v11 = vld [vmem:[%s3684_s2 + $0x104] ss:$16 sps:$4 sm:$0xff]  }
 0x186   :  { %v488_v3 = vpop.f32.mrf.mxu0  ;;  %1900 = vperm.xlu0 %2433, %v1784_v5   ;;  %v2477_v5 = vld [vmem:[%s3684_s2 + $0x160] ss:$16 sps:$4 sm:$0xff]  }
 0x187   :  { %1374 = vmatpush2.bf16.msra.mxu0 %v700_v7  ;;  %2421 = vmatpush2.bf16.msra.mxu1 %v700_v7  ;;  %v591_v19 = vmax.f32 %v488_v3, 0.0  ;;  %v2465_v7 = vld [vmem:[%s3684_s2 + $0xe0] ss:$16 sps:$4 sm:$0xff]  }
 0x188   :  { %v2363_v15 = vpop.f32.mrf.mxu0  ;;  %1375 = vmatprep.subr.bf16.mxu0 %v2600_v51  ;;  %2406 = vmatprep.subr.bf16.mxu1 %v2600_v51  ;;  %v1783_v3 = vld [vmem:[%s3686_s4 + $0x90] sm:$0xff] }
 0x189   :  { %1815 = vperm.xlu1 %2434, %v1767_v21  }
 0x18a   :  { %v491_v12 = vpop.f32.mrf.mxu0  ;;  %1910 = vperm.xlu0 %2433, %v1786_v16  }
 0x18b   :  { %v592_v24 = vmax.f32 %v491_v12, 0.0  ;;  %1376 = vmatpush2.bf16.msra.mxu0 %v699_v18  ;;  %2422 = vmatpush2.bf16.msra.mxu1 %v699_v18  ;;  %v1788_v12 = vld [vmem:[%s3686_s4 + $0xb8] sm:$0xff] }
 0x18c   :  { %v2364_v10 = vpop.f32.mrf.mxu0  ;;  %1377 = vmatprep.subr.bf16.mxu0 %v2600_v51  ;;  %2407 = vmatprep.subr.bf16.mxu1 %v2600_v51 }
 0x18d   :  { %v3047_v28 = vpack.c.bf16 %v592_v24, %v591_v19  ;;  %1825 = vperm.xlu1 %2434, %v1769_v9   ;;  %v1785_v19 = vld [vmem:[%s3686_s4 + $0xa0] sm:$0xff]  ;;  %v1787_v10 = vld [vmem:[%s3686_s4 + $0xb0] sm:$0xff] }
 0x18e   :  { %v496_v31 = vpop.f32.mrf.mxu0  ;;  %v2513_v24 = vld [vmem:[%s3684_s2 + $0x40] ss:$16 sps:$4 sm:$0xff]   ;;  %1920 = vperm.xlu0 %2433, %v1788_v12  }
 0x18f   :  { %1378 = vmatpush2.bf16.msra.mxu0 %v698_v27  ;;  %2423 = vmatpush2.bf16.msra.mxu1 %v698_v27  ;;  %v593_v36 = vmax.f32 %v496_v31, 0.0  ;;  %v2518_v27 = vld [vmem:[%s3684_s2 + $0x64] ss:$16 sps:$4 sm:$0xff]   ;;  %v1790_v31 = vld [vmem:[%s3686_s4 + $0xc8] sm:$0xff] }
 0x190   :  { %v2367_v33 = vpop.f32.mrf.mxu0  ;;  %1379 = vmatprep.subr.bf16.mxu0 %v2600_v51  ;;  %2408 = vmatprep.subr.bf16.mxu1 %v2600_v51  ;;  %v1799_v12 = vld [vmem:[%s3686_s4 + $0x110] sm:$0xff] }
 0x191   :  { %1835 = vperm.xlu1 %2434, %v1771_v34   ;;  %v2472_v34 = vld [vmem:[%s3684_s2 + $0x144] ss:$16 sps:$4 sm:$0xff]  }
 0x192   :  { %v499_v38 = vpop.f32.mrf.mxu0  ;;  %1930 = vperm.xlu0 %2433, %v1790_v31   ;;  %v1802_v31 = vld [vmem:[%s3686_s4 + $0x128] sm:$0xf] }
 0x193   :  { %v594_v40 = vmax.f32 %v499_v38, 0.0  ;;  %1380 = vmatpush2.bf16.msra.mxu0 %v697_v35  ;;  %2424 = vmatpush2.bf16.msra.mxu1 %v697_v35  ;;  %v1791_v38 = vld [vmem:[%s3686_s4 + $0xd0] sm:$0xff] }
 0x194   :  { %v2368_v41 = vpop.f32.mrf.mxu0  ;;  %1381 = vmatprep.subr.bf16.mxu0 %v2600_v51  ;;  %2409 = vmatprep.subr.bf16.mxu1 %v2600_v51 }
 0x195   :  { %v3069_v43 = vpack.c.bf16 %v594_v40, %v593_v36  ;;  %1845 = vperm.xlu1 %2434, %v1773_v26   ;;  %v2471_v36 = vld [vmem:[%s3684_s2 + $0x120] ss:$16 sps:$4 sm:$0xff]   ;;  %v1794_v41 = vld [vmem:[%s3686_s4 + $0xe8] sm:$0xff] }
 0x196   :  { %v3074_v45 = vpop.f32.mrf.mxu0  ;;  %1940 = vperm.xlu0 %2433, %v1792_v2   ;;  %v2486_v2 = vld [vmem:[%s3684_s2 + $0x1c0] ss:$16 sps:$4 sm:$0xff]  }
 0x197   :  { %1382 = vmatpush2.bf16.msra.mxu0 %v696_v42  ;;  %2425 = vmatpush2.bf16.msra.mxu1 %v696_v42  ;;  %v1793_v42 = vld [vmem:[%s3686_s4 + $0xe0] sm:$0xff] }
 0x198   :  { %v2371_v23 = vpop.f32.mrf.mxu0  ;;  %1383 = vmatprep.subr.bf16.mxu0 %v2600_v51  ;;  %2410 = vmatprep.subr.bf16.mxu1 %v2600_v51 }
 0x199   :  { %1855 = vperm.xlu1 %2434, %v1775_v50   ;;  %v1795_v50 = vld [vmem:[%s3686_s4 + $0xf0] sm:$0xff] }
 0x19a   :  { %v3085_v49 = vpop.f32.mrf.mxu0  ;;  %1950 = vperm.xlu0 %2433, %v1794_v41   ;;  %v2502_v41 = vld [vmem:[%s3684_s2 + $0x8] ss:$16 sps:$4 sm:$0xff]  }
 0x19b   :  { %1384 = vmatpush2.bf16.msra.mxu0 %v695_v47  ;;  %2426 = vmatpush2.bf16.msra.mxu1 %v695_v47  ;;  %v2474_v47 = vld [vmem:[%s3684_s2 + $0x140] ss:$16 sps:$4 sm:$0xff]  }
 0x19c   :  { %v2372_v14 = vpop.f32.mrf.mxu0  ;;  %1385 = vmatprep.subr.bf16.mxu0 %v2600_v51  ;;  %2411 = vmatprep.subr.bf16.mxu1 %v2600_v51 }
 0x19d   :  { %1865 = vperm.xlu1 %2434, %v1777_v54  }
 0x19e   :  { %v3095_v53 = vpop.f32.mrf.mxu0  ;;  %1960 = vperm.xlu0 %2433, %v1796_v46   ;;  %v2520_v46 = vld [vmem:[%s3684_s2 + $0x6c] ss:$16 sps:$4 sm:$0xff]  }
 0x19f   :  { %1386 = vmatpush2.bf16.msra.mxu0 %v2925_v17  ;;  %2427 = vmatpush2.bf16.msra.mxu1 %v2925_v17  ;;  %v2498_v17 = vld [vmem:[%s3684_s2] ss:$16 sps:$4 sm:$0xff]  }
 0x1a0   :  { %v2375_v55 = vpop.f32.mrf.mxu0  ;;  %1387 = vmatprep.subr.bf16.mxu0 %v2600_v51  ;;  %2412 = vmatprep.subr.bf16.mxu1 %v2600_v51 }
 0x1a1   :  { %1875 = vperm.xlu1 %2434, %v1779_v60   ;;  %v2475_v55 = vld [vmem:[%s3684_s2 + $0x164] ss:$16 sps:$4 sm:$0xff]  }
 0x1a2   :  { %v3107_v57 = vpop.f32.mrf.mxu0 }
 0x1a3   :  { %1388 = vmatpush2.bf16.msra.mxu0 %v2903_v59  ;;  %2428 = vmatpush2.bf16.msra.mxu1 %v2903_v59  ;;  %v1781_v59 = vld [vmem:[%s3686_s4 + $0x80] sm:$0xff] }
 0x1a4   :  { %v2376_v63 = vpop.f32.mrf.mxu0  ;;  %1542 = vmatprep.subr.bf16.mxu1 %v2600_v51 }
 0x1a5   :  { %1885 = vperm.xlu1 %2434, %v1781_v59  }
 0x1a6   :  { %v3130_v1 = vpop.f32.mrf.mxu0  ;;  %1438 = vmatmul.mubr.bf16.vlgmr.msra.gmra.mxu1 %v2460_v58  ;;  %1390 = vmatmul.mubr.bf16.vlgmr.msra.gmra.mxu0 %v2498_v17  ;;  %v2530_v58 = vld [vmem:[%s3684_s2 + $0xa4] ss:$16 sps:$4 sm:$0xff]  }
 0x1a7   :  { %1445 = vmatprep.mubr.bf16.mxu1 %v2463_v61  ;;  %1397 = vmatprep.mubr.bf16.mxu0 %v2505_v62  ;;  %v745_v61 = vld [vmem:[%s3685_s3 + $0x118] sm:$0xff]  ;;  %v1797_v62 = vld [vmem:[%s3686_s4 + $0x100] sm:$0xff] }
 0x1a8   :  { %v2379_v4 = vpop.f32.mrf.mxu0  ;;  %1965 = vperm.xlu0 %2433, %v1797_v62   ;;  %v2547_v62 = vld [vmem:[%s3684_s2 + $0x14c] ss:$16 sps:$4 sm:$0xff]  }
 0x1a9   :  { %1895 = vperm.xlu1 %2434, %v1783_v3   ;;  %v746_v3 = vld [vmem:[%s3685_s3 + $0x120] sm:$0xff] }
 0x1aa   :  { %v3138_v6 = vpop.f32.mrf.mxu0 }
 0x1ac   :  { %v2380_v15 = vpop.f32.mrf.mxu0 }
 0x1ad   :  { %1905 = vperm.xlu1 %2434, %v1785_v19   ;;  %v2478_v15 = vld [vmem:[%s3684_s2 + $0x184] ss:$16 sps:$4 sm:$0xff]   ;;  %v600_v19 = vmax.f32 %v3138_v6, 0.0  ;;  %v598_v6 = vmax.f32 %v3107_v57, 0.0  ;;  %v595_v57 = vmax.f32 %v3074_v45, 0.0 }
 0x1ae   :  { %v3158_v18 = vpop.f32.mrf.mxu0  ;;  %1446 = vmatmul.mubr.bf16.gmra.mxu1 %v2465_v7  ;;  %1398 = vmatmul.mubr.bf16.gmra.mxu0 %v2507_v8  ;;  %v2528_v8 = vld [vmem:[%s3684_s2 + $0xa0] ss:$16 sps:$4 sm:$0xff]  }
 0x1af   :  { %1453 = vmatprep.mubr.bf16.mxu1 %v2466_v11  ;;  %1405 = vmatprep.mubr.bf16.mxu0 %v2510_v13  ;;  %v601_v63 = vmax.f32 %v3158_v18, 0.0  ;;  %v1798_v11 = vld [vmem:[%s3686_s4 + $0x108] sm:$0xff]  ;;  %v599_v18 = vmax.f32 %v3130_v1, 0.0  ;;  %v597_v1 = vmax.f32 %v3095_v53, 0.0  ;;  %v2481_v53 = vld [vmem:[%s3684_s2 + $0x1a4] ss:$16 sps:$4 sm:$0xff]  }
 0x1b0   :  { %v2383_v20 = vpop.f32.mrf.mxu0  ;;  %1970 = vperm.xlu0 %2433, %v1798_v11   ;;  %v2483_v45 = vld [vmem:[%s3684_s2 + $0x1a0] ss:$16 sps:$4 sm:$0xff]   ;;  %v3419_v11 = vpop.permute.xlu0 %750 }
 0x1b1   :  { %1915 = vperm.xlu1 %2434, %v1787_v10   ;;  %v747_v20 = vld [vmem:[%s3685_s3 + $0x128] sm:$0xf]  ;;  %v1800_v10 = vld [vmem:[%s3686_s4 + $0x118] sm:$0xff] }
 0x1b2   :  { %v3166_v21 = vpop.f32.mrf.mxu0 }
 0x1b3   :  { %v602_v0 = vmax.f32 %v3166_v21, 0.0  ;;  %v705_v21 = vpack.c.bf16 %v600_v19, %v599_v18  ;;  %v2556_v18 = vld [vmem:[%s3684_s2 + $0x1ac] ss:$16 sps:$4 sm:$0xff]  }
 0x1b4   :  { %v2384_v29 = vpop.f32.mrf.mxu0  ;;  %1975 = vperm.xlu0 %2433, %v1799_v12   ;;  %v3431_v12 = vpop.permute.xlu1 %760 }
 0x1b5   :  { %1925 = vperm.xlu1 %2434, %v1789_v32   ;;  %v706_v13 = vpack.c.bf16 %v602_v0, %v601_v63  ;;  %v2076_v29 = vld [vmem:[#allocation2] sm:$0x1]  ;;  %v2549_v63 = vld [vmem:[%s3684_s2 + $0x148] ss:$16 sps:$4 sm:$0xff]   ;;  %v2550_v0 = vld [vmem:[%s3684_s2 + $0x16c] ss:$16 sps:$4 sm:$0xff]  }
 0x1b6   :  { %v536_v9 = vpop.f32.mrf.mxu0  ;;  %1454 = vmatmul.mubr.bf16.gmra.mxu1 %v2468_v22  ;;  %1406 = vmatmul.mubr.bf16.gmra.mxu0 %v2513_v24  ;;  %v2480_v22 = vld [vmem:[%s3684_s2 + $0x180] ss:$16 sps:$4 sm:$0xff]  }
 0x1b7   :  { %1461 = vmatprep.mubr.bf16.mxu1 %v2469_v25  ;;  %1413 = vmatprep.mubr.bf16.mxu0 %v2518_v27  ;;  %v603_v14 = vmax.f32 %v536_v9, 0.0  ;;  %v1801_v24 = vld [vmem:[%s3686_s4 + $0x120] sm:$0xff]  ;;  %v596_v25 = vmax.f32 %v3085_v49, 0.0  ;;  %v704_v27 = vpack.c.bf16 %v598_v6, %v597_v1 }
 0x1b8   :  { %v2387_v33 = vpop.f32.mrf.mxu0  ;;  %1985 = vperm.xlu0 %2433, %v1801_v24   ;;  %v2484_v49 = vld [vmem:[%s3684_s2 + $0x1c4] ss:$16 sps:$4 sm:$0xff]  }
 0x1b9   :  { %1935 = vperm.xlu1 %2434, %v1791_v38   ;;  %v703_v9 = vpack.c.bf16 %v596_v25, %v595_v57  ;;  %v2495_v38 = vld [vmem:[%s3684_s2 + $0x220] ss:$16 sps:$4 sm:$0xff]   ;;  %v3447_v25 = vpop.permute.xlu1 %765 }
 0x1ba   :  { %v539_v35 = vpop.f32.mrf.mxu0 }
 0x1bb   :  { %v604_v52 = vmax.f32 %v539_v35, 0.0  ;;  %v2487_v35 = vld [vmem:[%s3684_s2 + $0x1e4] ss:$16 sps:$4 sm:$0xff]  }
 0x1bc   :  { %v2388_v40 = vpop.f32.mrf.mxu0  ;;  %2079 = vperm.xlu0 %2433, %v2076_v29  }
 0x1bd   :  { %1945 = vperm.xlu1 %2434, %v1793_v42   ;;  %v707_v59 = vpack.c.bf16 %v604_v52, %v603_v14  ;;  %v2504_v40 = vld [vmem:[%s3684_s2 + $0xc] ss:$16 sps:$4 sm:$0xff]   ;;  %v2512_v42 = vld [vmem:[%s3684_s2 + $0x28] ss:$16 sps:$4 sm:$0xff]  }
 0x1be   :  { %v544_v30 = vpop.f32.mrf.mxu0  ;;  %1462 = vmatmul.mubr.bf16.gmra.mxu1 %v2471_v36  ;;  %1414 = vmatmul.mubr.bf16.gmra.mxu0 %v2516_v37  ;;  %v2490_v37 = vld [vmem:[%s3684_s2 + $0x204] ss:$16 sps:$4 sm:$0xff]   ;;  %v2534_v14 = vld [vmem:[%s3684_s2 + $0xa8] ss:$16 sps:$4 sm:$0xff]   ;;  %v2535_v52 = vld [vmem:[%s3684_s2 + $0xcc] ss:$16 sps:$4 sm:$0xff]  }
 0x1bf   :  { %1469 = vmatprep.mubr.bf16.mxu1 %v2472_v34  ;;  %1421 = vmatprep.mubr.bf16.mxu0 %v2524_v39  ;;  %v605_v26 = vmax.f32 %v544_v30, 0.0  ;;  %v2496_v34 = vld [vmem:[%s3684_s2 + $0x244] ss:$16 sps:$4 sm:$0x3f]   ;;  %v2508_v30 = vld [vmem:[%s3684_s2 + $0x2c] ss:$16 sps:$4 sm:$0xff]  }
 0x1c0   :  { %v2391_v44 = vpop.f32.mrf.mxu0  ;;  %v2501_v39 = vld [vmem:[%s3684_s2 + $0x240] ss:$16 sps:$4 sm:$0x3f]  }
 0x1c1   :  { %1955 = vperm.xlu1 %2434, %v1795_v50   ;;  %v2514_v44 = vld [vmem:[%s3684_s2 + $0x4c] ss:$16 sps:$4 sm:$0xff]  }
 0x1c2   :  { %v547_v23 = vpop.f32.mrf.mxu0  ;;  %v2532_v50 = vld [vmem:[%s3684_s2 + $0xac] ss:$16 sps:$4 sm:$0xff]  }
 0x1c3   :  { %v606_v54 = vmax.f32 %v547_v23, 0.0  ;;  %v2525_v23 = vld [vmem:[%s3684_s2 + $0x68] ss:$16 sps:$4 sm:$0xff]  }
 0x1c4   :  { %v2392_v56 = vpop.f32.mrf.mxu0 }
 0x1c5   :  { %v708_v17 = vpack.c.bf16 %v606_v54, %v605_v26  ;;  %925 = vperm.xlu1 %2434, %v745_v61   ;;  %v2519_v26 = vld [vmem:[%s3684_s2 + $0x48] ss:$16 sps:$4 sm:$0xff]  }
 0x1c6   :  { %1470 = vmatmul.mubr.bf16.gmra.mxu1 %v2474_v47  ;;  %v3231_v60 = vpop.f32.mrf.mxu0  ;;  %1422 = vmatmul.mubr.bf16.gmra.mxu0 %v2522_v48  ;;  %v2526_v47 = vld [vmem:[%s3684_s2 + $0x8c] ss:$16 sps:$4 sm:$0xff]   ;;  %v2531_v48 = vld [vmem:[%s3684_s2 + $0x88] ss:$16 sps:$4 sm:$0xff]  }
 0x1c7   :  { %1543 = vmatpush1.bf16.msra.mxu1 %v708_v17  ;;  %1477 = vmatprep.mubr.bf16.mxu1 %v2475_v55  ;;  %v607_v32 = vmax.f32 %v3231_v60, 0.0  ;;  %v2537_v54 = vld [vmem:[%s3684_s2 + $0xc8] ss:$16 sps:$4 sm:$0xff]   ;;  %v2538_v55 = vld [vmem:[%s3684_s2 + $0xec] ss:$16 sps:$4 sm:$0xff]  }
 0x1c8   :  { %1544 = vmatprep.subr.bf16.mxu1 %v2600_v51  ;;  %v2395_v4 = vpop.f32.mrf.mxu0  ;;  %1429 = vmatprep.mubr.bf16.mxu0 %v2530_v58  ;;  %v2540_v56 = vld [vmem:[%s3684_s2 + $0xe8] ss:$16 sps:$4 sm:$0xff]   ;;  %v2541_v58 = vld [vmem:[%s3684_s2 + $0x10c] ss:$16 sps:$4 sm:$0xff]  }
 0x1c9   :  { %930 = vperm.xlu1 %2434, %v746_v3   ;;  %v2543_v17 = vld [vmem:[%s3684_s2 + $0x108] ss:$16 sps:$4 sm:$0xff]   ;;  %v2544_v60 = vld [vmem:[%s3684_s2 + $0x12c] ss:$16 sps:$4 sm:$0xff]  }
 0x1ca   :  { %v555_v7 = vpop.f32.mrf.mxu0  ;;  %v2546_v61 = vld [vmem:[%s3684_s2 + $0x128] ss:$16 sps:$4 sm:$0xff]   ;;  %v2553_v4 = vld [vmem:[%s3684_s2 + $0x18c] ss:$16 sps:$4 sm:$0xff]  }
 0x1cb   :  { %1545 = vmatpush1.bf16.msra.mxu1 %v707_v59  ;;  %v608_v33 = vmax.f32 %v555_v7, 0.0  ;;  %v2552_v59 = vld [vmem:[%s3684_s2 + $0x168] ss:$16 sps:$4 sm:$0xff]  }
 0x1cc   :  { %1546 = vmatprep.subr.bf16.mxu1 %v2600_v51  ;;  %v2396_v16 = vpop.f32.mrf.mxu0 }
 0x1cd   :  { %935 = vperm.xlu1 %2434, %v747_v20   ;;  %v709_v36 = vpack.c.bf16 %v608_v33, %v607_v32 }
 0x1ce   :  { %1478 = vmatmul.mubr.bf16.gmra.mxu1 %v2477_v5  ;;  %1430 = vmatmul.mubr.bf16.gmra.mxu0 %v2528_v8 }
 0x1cf   :  { %1547 = vmatpush1.bf16.msra.mxu1 %v706_v13  ;;  %1485 = vmatprep.mubr.bf16.mxu1 %v2478_v15  ;;  %v2555_v15 = vld [vmem:[%s3684_s2 + $0x188] ss:$16 sps:$4 sm:$0xff]  }
 0x1d0   :  { %1548 = vmatprep.subr.bf16.mxu1 %v2600_v51 }
 0x1d1   :  { %1980 = vperm.xlu1 %2434, %v1800_v10  }
 0x1d3   :  { %1549 = vmatpush1.bf16.msra.mxu1 %v705_v21  ;;  %v3437_v21 = vpop.permute.xlu0 %755 }
 0x1d4   :  { %1550 = vmatprep.subr.bf16.mxu1 %v2600_v51 }
 0x1d5   :  { %1990 = vperm.xlu1 %2434, %v1802_v31  }
 0x1d6   :  { %1486 = vmatmul.mubr.bf16.gmra.mxu1 %v2480_v22 }
 0x1d7   :  { %1551 = vmatpush1.bf16.msra.mxu1 %v704_v27  ;;  %1493 = vmatprep.mubr.bf16.mxu1 %v2481_v53  ;;  %v2558_v53 = vld [vmem:[%s3684_s2 + $0x1a8] ss:$16 sps:$4 sm:$0xff]   ;;  %v2559_v27 = vld [vmem:[%s3684_s2 + $0x1cc] ss:$16 sps:$4 sm:$0xff]  }
 0x1d8   :  { %1552 = vmatprep.subr.bf16.mxu1 %v2600_v51 }
 0x1db   :  { %1553 = vmatpush1.bf16.msra.mxu1 %v703_v9  ;;  %v3452_v9 = vpop.permute.xlu0 %770 }
 0x1dc   :  { %1554 = vmatprep.subr.bf16.mxu1 %v2600_v51 }
 0x1de   :  { %1494 = vmatmul.mubr.bf16.gmra.mxu1 %v2483_v45 }
 0x1df   :  { %1555 = vmatpush1.bf16.msra.mxu1 %v3069_v43  ;;  %1501 = vmatprep.mubr.bf16.mxu1 %v2484_v49  ;;  %v2489_v43 = vld [vmem:[%s3684_s2 + $0x1e0] ss:$16 sps:$4 sm:$0xff]  }
 0x1e0   :  { %1556 = vmatprep.subr.bf16.mxu1 %v2600_v51 }
 0x1e3   :  { %1557 = vmatpush1.bf16.msra.mxu1 %v3047_v28  ;;  %v2492_v28 = vld [vmem:[%s3684_s2 + $0x200] ss:$16 sps:$4 sm:$0xff]  }
 0x1e4   :  { %1572 = vmatprep.subr.bf16.mxu1 %v2600_v51  ;;  %v2493_v51 = vld [vmem:[%s3684_s2 + $0x224] ss:$16 sps:$4 sm:$0xff]  }
 0x1e6   :  { %1502 = vmatmul.mubr.bf16.gmra.mxu1 %v2486_v2  ;;  %v3459_v2 = vpop.permute.xlu1 %775 }
 0x1e7   :  { %1509 = vmatprep.mubr.bf16.mxu1 %v2487_v35  ;;  %1573 = vmatpush2.bf16.msra.mxu1 %v709_v36  ;;  %v2561_v36 = vld [vmem:[%s3684_s2 + $0x1c8] ss:$16 sps:$4 sm:$0xff]  }
 0x1ee   :  { %1510 = vmatmul.mubr.bf16.gmra.mxu1 %v2489_v43 }
 0x1ef   :  { %1517 = vmatprep.mubr.bf16.mxu1 %v2490_v37  ;;  %v3468_v37 = vpop.permute.xlu0 %780 }
 0x1f6   :  { %1518 = vmatmul.mubr.bf16.gmra.mxu1 %v2492_v28  ;;  %v2562_v28 = vld [vmem:[%s3684_s2 + $0x1ec] ss:$16 sps:$4 sm:$0xff]  }
 0x1f7   :  { %1525 = vmatprep.mubr.bf16.mxu1 %v2493_v51 }
 0x1fe   :  { %1526 = vmatmul.mubr.bf16.gmra.mxu1 %v2495_v38 }
 0x1ff   :  { %1533 = vmatprep.mubr.bf16.mxu1 %v2496_v34 }
 0x206   :  { %1534 = vmatmul.mubr.bf16.gmra.mxu1 %v2501_v39 }
 0x207   :  { %2229 = vmatprep.mubr.msk.bf16.mxu1 %vm1299_vm2, %v2504_v40  ;;  %v3477_v40 = vpop.permute.xlu1 %785 }
 0x20e   :  { %1575 = vmatmul.mubr.bf16.vlgmr.msra.gmra.mxu1 %v2502_v41 }
 0x20f   :  { %2230 = vmatprep.mubr.msk.bf16.mxu1 %vm1299_vm2, %v2508_v30 }
 0x216   :  { %1583 = vmatmul.mubr.bf16.gmra.mxu1 %v2512_v42  ;;  %v3480_v42 = vpop.permute.xlu0 %790 }
 0x217   :  { %2231 = vmatprep.mubr.msk.bf16.mxu1 %vm1299_vm2, %v2514_v44 }
 0x21e   :  { %1591 = vmatmul.mubr.bf16.gmra.mxu1 %v2519_v26  ;;  %v2564_v26 = vld [vmem:[%s3684_s2 + $0x1e8] ss:$16 sps:$4 sm:$0xff]  }
 0x21f   :  { %2232 = vmatprep.mubr.msk.bf16.mxu1 %vm1299_vm2, %v2520_v46 }
 0x226   :  { %1599 = vmatmul.mubr.bf16.gmra.mxu1 %v2525_v23  ;;  %v2565_v23 = vld [vmem:[%s3684_s2 + $0x20c] ss:$16 sps:$4 sm:$0xff]  }
 0x227   :  { %2233 = vmatprep.mubr.msk.bf16.mxu1 %vm1299_vm2, %v2526_v47 }
 0x22e   :  { %1607 = vmatmul.mubr.bf16.gmra.mxu1 %v2531_v48 }
 0x22f   :  { %2234 = vmatprep.mubr.msk.bf16.mxu1 %vm1299_vm2, %v2532_v50  ;;  %v3492_v50 = vpop.permute.xlu1 %795 }
 0x236   :  { %1615 = vmatmul.mubr.bf16.gmra.mxu1 %v2534_v14 }
 0x237   :  { %2235 = vmatprep.mubr.msk.bf16.mxu1 %vm1299_vm2, %v2535_v52 }
 0x23e   :  { %1623 = vmatmul.mubr.bf16.gmra.mxu1 %v2537_v54  ;;  %v3498_v54 = vpop.permute.xlu0 %800 }
 0x23f   :  { %2236 = vmatprep.mubr.msk.bf16.mxu1 %vm1299_vm2, %v2538_v55 }
 0x246   :  { %1631 = vmatmul.mubr.bf16.gmra.mxu1 %v2540_v56 }
 0x247   :  { %2237 = vmatprep.mubr.msk.bf16.mxu1 %vm1299_vm2, %v2541_v58 }
 0x24e   :  { %1639 = vmatmul.mubr.bf16.gmra.mxu1 %v2543_v17  ;;  %v2567_v17 = vld [vmem:[%s3684_s2 + $0x208] ss:$16 sps:$4 sm:$0xff]  }
 0x24f   :  { %2238 = vmatprep.mubr.msk.bf16.mxu1 %vm1299_vm2, %v2544_v60 }
 0x256   :  { %1647 = vmatmul.mubr.bf16.gmra.mxu1 %v2546_v61  ;;  %v3508_v61 = vpop.permute.xlu1 %805 }
 0x257   :  { %2239 = vmatprep.mubr.msk.bf16.mxu1 %vm1299_vm2, %v2547_v62  ;;  %v2568_v62 = vld [vmem:[%s3684_s2 + $0x22c] ss:$16 sps:$4 sm:$0xff]  }
 0x25e   :  { %1655 = vmatmul.mubr.bf16.gmra.mxu1 %v2549_v63 }
 0x25f   :  { %2240 = vmatprep.mubr.msk.bf16.mxu1 %vm1299_vm2, %v2550_v0 }
 0x266   :  { %v3414_v5 = vpop.f32.mrf.mxu1  ;;  %1663 = vmatmul.mubr.bf16.gmra.mxu1 %v2552_v59  ;;  %v3416_v7 = vpop.f32.mrf.mxu0 }
 0x267   :  { %2241 = vmatprep.mubr.msk.bf16.mxu1 %vm1299_vm2, %v2553_v4  ;;  %v3513_v59 = vpop.permute.xlu0 %810 }
 0x268   :  { %v1441_v8 = vpop.f32.mrf.mxu1  ;;  %v1393_v3 = vpop.f32.mrf.mxu0 }
 0x26a   :  { %v3421_v13 = vpop.f32.mrf.mxu1  ;;  %v3426_v16 = vpop.f32.mrf.mxu0 }
 0x26c   :  { %v1444_v19 = vpop.f32.mrf.mxu1  ;;  %v1396_v20 = vpop.f32.mrf.mxu0 }
 0x26d   :  { %v2570_v20 = vld [vmem:[%s3684_s2 + $0x228] ss:$16 sps:$4 sm:$0xff]  }
 0x26e   :  { %v3433_v1 = vpop.f32.mrf.mxu1  ;;  %1671 = vmatmul.mubr.bf16.gmra.mxu1 %v2555_v15  ;;  %v3435_v6 = vpop.f32.mrf.mxu0 }
 0x26f   :  { %2242 = vmatprep.mubr.msk.bf16.mxu1 %vm1299_vm2, %v2556_v18  ;;  %v3520_v18 = vpop.permute.xlu1 %815 }
 0x270   :  { %v1449_v22 = vpop.f32.mrf.mxu1  ;;  %v1401_v24 = vpop.f32.mrf.mxu0 }
 0x271   :  { %v3529_v24 = vpop.permute.xlu0 %820 }
 0x272   :  { %v3440_v10 = vpop.f32.mrf.mxu1  ;;  %v3445_v57 = vpop.f32.mrf.mxu0 }
 0x274   :  { %v1452_v29 = vpop.f32.mrf.mxu1  ;;  %v1404_v31 = vpop.f32.mrf.mxu0 }
 0x276   :  { %v3454_v45 = vpop.f32.mrf.mxu1  ;;  %1679 = vmatmul.mubr.bf16.gmra.mxu1 %v2558_v53  ;;  %v3456_v49 = vpop.f32.mrf.mxu0  ;;  %v2571_v53 = vld [vmem:[%s3684_s2 + $0x24c] ss:$16 sps:$4 sm:$0x3f]  }
 0x277   :  { %2243 = vmatprep.mubr.msk.bf16.mxu1 %vm1299_vm2, %v2559_v27 }
 0x278   :  { %v1457_v32 = vpop.f32.mrf.mxu1  ;;  %v1409_v33 = vpop.f32.mrf.mxu0 }
 0x279   :  { %v3537_v32 = vpop.permute.xlu1 %825 }
 0x27a   :  { %v3461_v35 = vpop.f32.mrf.mxu1  ;;  %v3466_v43 = vpop.f32.mrf.mxu0 }
 0x27c   :  { %v1460_v51 = vpop.f32.mrf.mxu1  ;;  %v1412_v38 = vpop.f32.mrf.mxu0 }
 0x27d   :  { %v2573_v51 = vld [vmem:[%s3684_s2 + $0x248] ss:$16 sps:$4 sm:$0x3f]   ;;  %s2601_s2 = smov [#allocation3]  }
 0x27e   :  { %v3473_v34 = vpop.f32.mrf.mxu1  ;;  %1687 = vmatmul.mubr.bf16.gmra.mxu1 %v2561_v36  ;;  %v3475_v39 = vpop.f32.mrf.mxu0  ;;  %s2095_s27 = sshll.u32 %s2601_s2, 4  ;;  %s2096_s27 = int_to_ptr.vmem [resolvable:$true] %s2095_s27 }
 0x27f   :  { %2244 = vmatprep.mubr.msk.bf16.mxu1 %vm1299_vm2, %v2562_v28  ;;  %v3539_v36 = vpop.permute.xlu0 %830  ;;  %s2576_s1 = scalar_lea.vmem %s2096_s27, 16  ;;  %s2580_s28 = scalar_lea.vmem %s2096_s27, 32 }
 0x280   :  { %v1465_v41 = vpop.f32.mrf.mxu1  ;;  %v1417_v30 = vpop.f32.mrf.mxu0  ;;  %p2577_p0 = scmp.ne.s32.totalorder %s2096_s27, %s2576_s1  ;;  %p2581_p1 = scmp.lt.s32.totalorder %s2096_s27, %s2096_s27 }
 0x281   :  { %v3546_v41 = vpop.permute.xlu1 %835  ;;  %p2582_p2 = scmp.lt.s32.totalorder %s2580_s28, %s2576_s1 }
 0x282   :  { %v3482_v44 = vpop.f32.mrf.mxu1  ;;  %v3487_v46 = vpop.f32.mrf.mxu0 }
 0x283   :  { %p2583_p3 = por %p2582_p2, %p2581_p1 }
 0x284   :  { %v1468_v47 = vpop.f32.mrf.mxu1  ;;  %v1420_v48 = vpop.f32.mrf.mxu0 }
 0x285   :  { %v3554_v48 = vpop.permute.xlu1 %845  ;;  %p2584_p4 = pnand %p2583_p3, %p2577_p0 }
 0x286   :  { %v3494_v14 = vpop.f32.mrf.mxu1  ;;  %1695 = vmatmul.mubr.bf16.gmra.mxu1 %v2564_v26  ;;  %v3496_v52 = vpop.f32.mrf.mxu0 }
 0x287   :  { %2245 = vmatprep.mubr.msk.bf16.mxu1 %vm1299_vm2, %v2565_v23  ;;  %v3550_v26 = vpop.permute.xlu0 %840 }
 0x288   :  { %v1473_v55 = vpop.f32.mrf.mxu1  ;;  %v1425_v56 = vpop.f32.mrf.mxu0 }
 0x28a   :  { %v3501_v58 = vpop.f32.mrf.mxu1  ;;  %v3506_v60 = vpop.f32.mrf.mxu0 }
 0x28b   :  { %v3556_v56 = vpop.permute.xlu0 %850 }
 0x28c   :  { %v1476_v63 = vpop.f32.mrf.mxu1  ;;  %v1428_v0 = vpop.f32.mrf.mxu0 }
 0x28d   :  { %v3560_v63 = vpop.permute.xlu1 %855 }
 0x28e   :  { %v3515_v4 = vpop.f32.mrf.mxu1  ;;  %1703 = vmatmul.mubr.bf16.gmra.mxu1 %v2567_v17  ;;  %v3517_v8 = vpop.f32.mrf.mxu0 }
 0x28f   :  { %2246 = vmatprep.mubr.msk.bf16.mxu1 %vm1299_vm2, %v2568_v62 }
 0x290   :  { %v1481_v3 = vpop.f32.mrf.mxu1  ;;  %v1433_v15 = vpop.f32.mrf.mxu0 }
 0x291   :  { %v3564_v3 = vpop.permute.xlu0 %860 }
 0x292   :  { %v3522_v19 = vpop.f32.mrf.mxu1  ;;  %v3527_v22 = vpop.f32.mrf.mxu0 }
 0x293   :  { %3689 = vst [vmem:[#allocation6_spill] sm:$0xff] %v3522_v19 }
 0x294   :  { %v1484_v27 = vpop.f32.mrf.mxu1  ;;  %v1436_v29 = vpop.f32.mrf.mxu0 }
 0x295   :  { %v3570_v29 = vpop.permute.xlu0 %870 }
 0x296   :  { %v3534_v31 = vpop.f32.mrf.mxu1  ;;  %1711 = vmatmul.mubr.bf16.gmra.mxu1 %v2570_v20  ;;  %3697 = vst [vmem:[#allocation14_spill] sm:$0xff] %v3570_v29 }
 0x297   :  { %3690 = vst [vmem:[#allocation7_spill] sm:$0xff] %v3534_v31  ;;  %2247 = vmatprep.mubr.msk.bf16.mxu1 %vm1299_vm2, %v2571_v53  ;;  %v3568_v53 = vpop.permute.xlu1 %865 }
 0x298   :  { %v1489_v33 = vpop.f32.mrf.mxu1 }
 0x29a   :  { %v3541_v28 = vpop.f32.mrf.mxu1 }
 0x29b   :  { %3691 = vst [vmem:[#allocation8_spill] sm:$0xff] %v3541_v28 }
 0x29c   :  { %v1492_v38 = vpop.f32.mrf.mxu1 }
 0x29d   :  { %v3574_v38 = vpop.permute.xlu1 %875 }
 0x29e   :  { %v3548_v30 = vpop.f32.mrf.mxu1  ;;  %1719 = vmatmul.mubr.bf16.gmra.mxu1 %v2573_v51  ;;  %3699 = vst [vmem:[#allocation16_spill] sm:$0xff] %v3574_v38 }
 0x29f   :  { %3692 = vst [vmem:[#allocation9_spill] sm:$0xff] %v3548_v30 }
 0x2a0   :  { %v1497_v23 = vpop.f32.mrf.mxu1 }
 0x2a2   :  { %v3552_v47 = vpop.f32.mrf.mxu1 }
 0x2a3   :  { %3693 = vst [vmem:[#allocation10_spill] sm:$0xff] %v3552_v47 }
 0x2a4   :  { %v1500_v55 = vpop.f32.mrf.mxu1 }
 0x2a5   :  { %v3578_v55 = vpop.permute.xlu0 %880 }
 0x2a6   :  { %v3558_v17 = vpop.f32.mrf.mxu1  ;;  %3701 = vst [vmem:[#allocation18_spill] sm:$0xff] %v3578_v55 }
 0x2a7   :  { %3694 = vst [vmem:[#allocation11_spill] sm:$0xff] %v3558_v17 }
 0x2a8   :  { %v1505_v62 = vpop.f32.mrf.mxu1 }
 0x2a9   :  { %v3584_v17 = vpop.permute.xlu0 %890 }
 0x2aa   :  { %v3562_v0 = vpop.f32.mrf.mxu1  ;;  %3704 = vst [vmem:[#allocation21_spill] sm:$0xff] %v3584_v17 }
 0x2ab   :  { %3695 = vst [vmem:[#allocation12_spill] sm:$0xff] %v3562_v0 }
 0x2ac   :  { %v1508_v15 = vpop.f32.mrf.mxu1 }
 0x2ad   :  { %v3582_v15 = vpop.permute.xlu1 %885 }
 0x2ae   :  { %v3566_v20 = vpop.f32.mrf.mxu1  ;;  %3703 = vst [vmem:[#allocation20_spill] sm:$0xff] %v3582_v15 }
 0x2af   :  { %3696 = vst [vmem:[#allocation13_spill] sm:$0xff] %v3566_v20 }
 0x2b0   :  { %v1513_v27 = vpop.f32.mrf.mxu1 }
 0x2b1   :  { %v3588_v30 = vpop.permute.xlu1 %895 }
 0x2b2   :  { %v3572_v33 = vpop.f32.mrf.mxu1  ;;  %3706 = vst [vmem:[#allocation23_spill] sm:$0xff] %v3588_v30 }
 0x2b3   :  { %3698 = vst [vmem:[#allocation15_spill] sm:$0xff] %v3572_v33  ;;  %v3592_v33 = vpop.permute.xlu0 %900 }
 0x2b4   :  { %v1516_v51 = vpop.f32.mrf.mxu1  ;;  %3708 = vst [vmem:[#allocation25_spill] sm:$0xff] %v3592_v33 }
 0x2b6   :  { %v3576_v23 = vpop.f32.mrf.mxu1 }
 0x2b7   :  { %3700 = vst [vmem:[#allocation17_spill] sm:$0xff] %v3576_v23  ;;  %v3598_v55 = vpop.permute.xlu0 %910 }
 0x2b8   :  { %v1521_v62 = vpop.f32.mrf.mxu1  ;;  %3711 = vst [vmem:[#allocation28_spill] sm:$0xff] %v3598_v55 }
 0x2b9   :  { %v3596_v62 = vpop.permute.xlu1 %905 }
 0x2ba   :  { %v3580_v0 = vpop.f32.mrf.mxu1  ;;  %3710 = vst [vmem:[#allocation27_spill] sm:$0xff] %v3596_v62 }
 0x2bb   :  { %3702 = vst [vmem:[#allocation19_spill] sm:$0xff] %v3580_v0  ;;  %v3608_v33 = vpop.permute.xlu0 %920 }
 0x2bc   :  { %v1524_v20 = vpop.f32.mrf.mxu1 }
 0x2bd   :  { %v3604_v17 = vpop.permute.xlu1 %915 }
 0x2be   :  { %v3586_v27 = vpop.f32.mrf.mxu1  ;;  %3713 = vst [vmem:[#allocation30_spill] sm:$0xff] %v3604_v17 }
 0x2bf   :  { %3705 = vst [vmem:[#allocation22_spill] sm:$0xff] %v3586_v27  ;;  %v1392_v27 = vadd.f32 %v3416_v7, %v3419_v11  ;;  %v1811_v11 = vpop.permute.xlu0 %1810 }
 0x2c0   :  { %v1529_v47 = vpop.f32.mrf.mxu1 }
 0x2c1   :  { %v1806_v55 = vpop.permute.xlu1 %1805 }
 0x2c2   :  { %v3590_v51 = vpop.f32.mrf.mxu1 }
 0x2c3   :  { %3707 = vst [vmem:[#allocation24_spill] sm:$0xff] %v3590_v51  ;;  %v1395_v51 = vadd.f32 %v3426_v16, %v3437_v21  ;;  %v1403_v21 = vadd.f32 %v3445_v57, %v3447_v25  ;;  %v1411_v57 = vadd.f32 %v3466_v43, %v3459_v2  ;;  %v1419_v2 = vadd.f32 %v3487_v46, %v3477_v40 }
 0x2c4   :  { %v1532_v23 = vpop.f32.mrf.mxu1  ;;  %v1427_v40 = vadd.f32 %v3506_v60, %v3492_v50  ;;  %v1435_v50 = vadd.f32 %v3527_v22, %v3508_v61 }
 0x2c6   :  { %v3594_v28 = vpop.f32.mrf.mxu1 }
 0x2c7   :  { %3709 = vst [vmem:[#allocation26_spill] sm:$0xff] %v3594_v28 }
 0x2c8   :  { %v1537_v0 = vpop.f32.mrf.mxu1 }
 0x2ca   :  { %v3600_v20 = vpop.f32.mrf.mxu1 }
 0x2cb   :  { %3712 = vst [vmem:[#allocation29_spill] sm:$0xff] %v3600_v20  ;;  %v1400_v20 = vadd.f32 %v3435_v6, %v3431_v12  ;;  %v1408_v12 = vadd.f32 %v3456_v49, %v3452_v9  ;;  %v1416_v9 = vadd.f32 %v3475_v39, %v3468_v37  ;;  %v1424_v37 = vadd.f32 %v3496_v52, %v3480_v42 }
 0x2cc   :  { %v1540_v47 = vpop.f32.mrf.mxu1  ;;  %v1432_v42 = vadd.f32 %v3517_v8, %v3498_v54 }
 0x2ce   :  { %v1576_v30 = vpop.f32.mrf.mxu1 }
 0x2cf   :  { %v1577_v23 = vadd.f32 %v1576_v30, %v1392_v27  ;;  %v1816_v30 = vpop.permute.xlu1 %1815 }
 0x2d0   :  { %v1578_v28 = vpop.f32.mrf.mxu1 }
 0x2d1   :  { %v1727_v0 = vmax.f32 %v1577_v23, 0.0 }
 0x2d2   :  { %v1579_v62 = vpop.f32.mrf.mxu1 }
 0x2d3   :  { %v1580_v15 = vadd.f32 %v1579_v62, %v1395_v51  ;;  %v1993_v17 = vmul.f32 %v1806_v55, %v1727_v0 }
 0x2d4   :  { %v1581_v38 = vpop.f32.mrf.mxu1 }
 0x2d5   :  { %v1728_v7 = vmax.f32 %v1580_v15, 0.0  ;;  %v1821_v15 = vpop.permute.xlu0 %1820 }
 0x2d6   :  { %v1584_v47 = vpop.f32.mrf.mxu1 }
 0x2d7   :  { %v1994_v31 = vmul.f32 %v1811_v11, %v1728_v7  ;;  %v1585_v29 = vadd.f32 %v1584_v47, %v1400_v20 }
 0x2d8   :  { %v1586_v19 = vpop.f32.mrf.mxu1 }
 0x2d9   :  { %v2031_v16 = vadd.f32 %v1994_v31, %v1993_v17  ;;  %v1729_v28 = vmax.f32 %v1585_v29, 0.0  ;;  %v1826_v17 = vpop.permute.xlu1 %1825 }
 0x2da   :  { %v1587_v27 = vpop.f32.mrf.mxu1 }
 0x2db   :  { %v1995_v51 = vmul.f32 %v1816_v30, %v1729_v28  ;;  %v1588_v62 = vadd.f32 %v1587_v27, %v1403_v21  ;;  %v1831_v21 = vpop.permute.xlu0 %1830 }
 0x2dc   :  { %v1589_v38 = vpop.f32.mrf.mxu1 }
 0x2dd   :  { %v2032_v23 = vadd.f32 %v2031_v16, %v1995_v51  ;;  %v1730_v6 = vmax.f32 %v1588_v62, 0.0  ;;  %v1836_v38 = vpop.permute.xlu1 %1835 }
 0x2de   :  { %v1592_v55 = vpop.f32.mrf.mxu1 }
 0x2df   :  { %v1996_v0 = vmul.f32 %v1821_v15, %v1730_v6  ;;  %v1593_v20 = vadd.f32 %v1592_v55, %v1408_v12 }
 0x2e0   :  { %v1594_v19 = vpop.f32.mrf.mxu1 }
 0x2e1   :  { %v2033_v31 = vadd.f32 %v2032_v23, %v1996_v0  ;;  %v1731_v25 = vmax.f32 %v1593_v20, 0.0  ;;  %v1841_v0 = vpop.permute.xlu0 %1840 }
 0x2e2   :  { %v1595_v29 = vpop.f32.mrf.mxu1 }
 0x2e3   :  { %v1997_v7 = vmul.f32 %v1826_v17, %v1731_v25  ;;  %v1596_v11 = vadd.f32 %v1595_v29, %v1411_v57  ;;  %v1846_v17 = vpop.permute.xlu1 %1845 }
 0x2e4   :  { %v1597_v47 = vpop.f32.mrf.mxu1 }
 0x2e5   :  { %v2034_v16 = vadd.f32 %v2033_v31, %v1997_v7  ;;  %v1732_v49 = vmax.f32 %v1596_v11, 0.0 }
 0x2e6   :  { %v1600_v28 = vpop.f32.mrf.mxu1 }
 0x2e7   :  { %v1998_v30 = vmul.f32 %v1831_v21, %v1732_v49  ;;  %v1601_v27 = vadd.f32 %v1600_v28, %v1416_v9  ;;  %v1851_v9 = vpop.permute.xlu0 %1850 }
 0x2e8   :  { %v1602_v51 = vpop.f32.mrf.mxu1 }
 0x2e9   :  { %v2035_v62 = vadd.f32 %v2034_v16, %v1998_v30  ;;  %v1733_v43 = vmax.f32 %v1601_v27, 0.0  ;;  %v1856_v51 = vpop.permute.xlu1 %1855 }
 0x2ea   :  { %v1603_v23 = vpop.f32.mrf.mxu1 }
 0x2eb   :  { %v1999_v12 = vmul.f32 %v1836_v38, %v1733_v43  ;;  %v1604_v6 = vadd.f32 %v1603_v23, %v1419_v2  ;;  %v1440_v23 = vadd.f32 %v3414_v5, %v3513_v59  ;;  %v1448_v5 = vadd.f32 %v3433_v1, %v3529_v24 }
 0x2ec   :  { %v1605_v15 = vpop.f32.mrf.mxu1  ;;  %v1456_v1 = vadd.f32 %v3454_v45, %v3539_v36  ;;  %v1464_v45 = vadd.f32 %v3473_v34, %v3550_v26  ;;  %v1472_v34 = vadd.f32 %v3494_v14, %v3556_v56  ;;  %v1480_v14 = vadd.f32 %v3515_v4, %v3564_v3 }
 0x2ed   :  { %v2036_v55 = vadd.f32 %v2035_v62, %v1999_v12  ;;  %v1734_v39 = vmax.f32 %v1604_v6, 0.0  ;;  %v1861_v12 = vpop.permute.xlu0 %1860 }
 0x2ee   :  { %v1608_v20 = vpop.f32.mrf.mxu1 }
 0x2ef   :  { %v2000_v19 = vmul.f32 %v1841_v0, %v1734_v39  ;;  %v1609_v31 = vadd.f32 %v1608_v20, %v1424_v37  ;;  %v1443_v39 = vadd.f32 %v3421_v13, %v3520_v18  ;;  %v1866_v0 = vpop.permute.xlu1 %1865  ;;  %v1451_v13 = vadd.f32 %v3440_v10, %v3537_v32 }
 0x2f0   :  { %v1610_v57 = vpop.f32.mrf.mxu1  ;;  %v1459_v10 = vadd.f32 %v3461_v35, %v3546_v41  ;;  %v1467_v35 = vadd.f32 %v3482_v44, %v3554_v48  ;;  %v1475_v44 = vadd.f32 %v3501_v58, %v3560_v63 }
 0x2f1   :  { %v2037_v25 = vadd.f32 %v2036_v55, %v2000_v19  ;;  %v1735_v46 = vmax.f32 %v1609_v31, 0.0 }
 0x2f2   :  { %v1611_v29 = vpop.f32.mrf.mxu1 }
 0x2f3   :  { %v2001_v7 = vmul.f32 %v1846_v17, %v1735_v46  ;;  %v1612_v11 = vadd.f32 %v1611_v29, %v1427_v40  ;;  %v1871_v40 = vpop.permute.xlu0 %1870 }
 0x2f4   :  { %v1613_v47 = vpop.f32.mrf.mxu1 }
 0x2f5   :  { %v2038_v16 = vadd.f32 %v2037_v25, %v2001_v7  ;;  %v1736_v52 = vmax.f32 %v1612_v11, 0.0  ;;  %v1876_v47 = vpop.permute.xlu1 %1875 }
 0x2f6   :  { %v1616_v49 = vpop.f32.mrf.mxu1 }
 0x2f7   :  { %v2002_v21 = vmul.f32 %v1851_v9, %v1736_v52  ;;  %v1617_v28 = vadd.f32 %v1616_v49, %v1432_v42 }
 0x2f8   :  { %v1618_v30 = vpop.f32.mrf.mxu1 }
 0x2f9   :  { %v2039_v27 = vadd.f32 %v2038_v16, %v2002_v21  ;;  %v1737_v60 = vmax.f32 %v1617_v28, 0.0  ;;  %v1881_v21 = vpop.permute.xlu0 %1880 }
 0x2fa   :  { %v1619_v62 = vpop.f32.mrf.mxu1 }
 0x2fb   :  { %v2003_v2 = vmul.f32 %v1856_v51, %v1737_v60  ;;  %v1620_v43 = vadd.f32 %v1619_v62, %v1435_v50  ;;  %v1886_v51 = vpop.permute.xlu1 %1885 }
 0x2fc   :  { %v1621_v38 = vpop.f32.mrf.mxu1 }
 0x2fd   :  { %v2040_v54 = vadd.f32 %v2039_v27, %v2003_v2  ;;  %v1738_v8 = vmax.f32 %v1620_v43, 0.0 }
 0x2fe   :  { %v1624_v6 = vpop.f32.mrf.mxu1 }
 0x2ff   :  { %v2004_v15 = vmul.f32 %v1861_v12, %v1738_v8  ;;  %v1625_v55 = vadd.f32 %v1624_v6, %v1440_v23 }
 0x300   :  { %v1626_v37 = vpop.f32.mrf.mxu1 }
 0x301   :  { %v2041_v61 = vadd.f32 %v2040_v54, %v2004_v15  ;;  %v1739_v22 = vmax.f32 %v1625_v55, 0.0  ;;  %v1891_v54 = vpop.permute.xlu0 %1890  ;;  %v1896_v37 = vpop.permute.xlu1 %1895 }
 0x302   :  { %v1627_v20 = vpop.f32.mrf.mxu1 }
 0x303   :  { %v2005_v19 = vmul.f32 %v1866_v0, %v1739_v22  ;;  %v1628_v31 = vadd.f32 %v1627_v20, %v1443_v39 }
 0x304   :  { %v1629_v57 = vpop.f32.mrf.mxu1 }
 0x305   :  { %v2042_v59 = vadd.f32 %v2041_v61, %v2005_v19  ;;  %v1740_v25 = vmax.f32 %v1628_v31, 0.0  ;;  %v1901_v19 = vpop.permute.xlu0 %1900 }
 0x306   :  { %v1632_v46 = vpop.f32.mrf.mxu1 }
 0x307   :  { %v2006_v17 = vmul.f32 %v1871_v40, %v1740_v25  ;;  %v1633_v29 = vadd.f32 %v1632_v46, %v1448_v5  ;;  %v1906_v40 = vpop.permute.xlu1 %1905 }
 0x308   :  { %v1634_v7 = vpop.f32.mrf.mxu1 }
 0x309   :  { %v2043_v18 = vadd.f32 %v2042_v59, %v2006_v17  ;;  %v1741_v11 = vmax.f32 %v1633_v29, 0.0 }
 0x30a   :  { %v1635_v16 = vpop.f32.mrf.mxu1 }
 0x30b   :  { %v2007_v42 = vmul.f32 %v1876_v47, %v1741_v11  ;;  %v1636_v52 = vadd.f32 %v1635_v16, %v1451_v13 }
 0x30c   :  { %v1637_v9 = vpop.f32.mrf.mxu1 }
 0x30d   :  { %v2044_v24 = vadd.f32 %v2043_v18, %v2007_v42  ;;  %v1742_v49 = vmax.f32 %v1636_v52, 0.0  ;;  %v1911_v18 = vpop.permute.xlu0 %1910  ;;  %v3714_v52 = vld [vmem:[#allocation6_spill] sm:$0xff] }
 0x30e   :  { %v1640_v28 = vpop.f32.mrf.mxu1  ;;  %v1483_v58 = vadd.f32 %v3714_v52, %v3568_v53 }
 0x30f   :  { %v2008_v30 = vmul.f32 %v1881_v21, %v1742_v49  ;;  %v1641_v27 = vadd.f32 %v1640_v28, %v1456_v1  ;;  %v1916_v1 = vpop.permute.xlu1 %1915 }
 0x310   :  { %v1642_v50 = vpop.f32.mrf.mxu1 }
 0x311   :  { %v2045_v32 = vadd.f32 %v2044_v24, %v2008_v30  ;;  %v1743_v60 = vmax.f32 %v1641_v27, 0.0  ;;  %v3715_v30 = vld [vmem:[#allocation14_spill] sm:$0xff]  ;;  %v3716_v27 = vld [vmem:[#allocation7_spill] sm:$0xff] }
 0x312   :  { %v1643_v62 = vpop.f32.mrf.mxu1  ;;  %v1488_v4 = vadd.f32 %v3716_v27, %v3715_v30 }
 0x313   :  { %v2009_v2 = vmul.f32 %v1886_v51, %v1743_v60  ;;  %v1644_v43 = vadd.f32 %v1643_v62, %v1459_v10  ;;  %v1921_v10 = vpop.permute.xlu0 %1920 }
 0x314   :  { %v1645_v38 = vpop.f32.mrf.mxu1 }
 0x315   :  { %v2046_v36 = vadd.f32 %v2045_v32, %v2009_v2  ;;  %v1744_v23 = vmax.f32 %v1644_v43, 0.0  ;;  %v3717_v2 = vld [vmem:[#allocation16_spill] sm:$0xff] }
 0x316   :  { %v1648_v8 = vpop.f32.mrf.mxu1  ;;  %v3718_v43 = vld [vmem:[#allocation8_spill] sm:$0xff] }
 0x317   :  { %v2010_v12 = vmul.f32 %v1891_v54, %v1744_v23  ;;  %v1649_v6 = vadd.f32 %v1648_v8, %v1464_v45  ;;  %v1491_v53 = vadd.f32 %v3718_v43, %v3717_v2  ;;  %v3730_v2 = vld [vmem:[#allocation15_spill] sm:$0xff] }
 0x318   :  { %v1650_v15 = vpop.f32.mrf.mxu1 }
 0x319   :  { %v2047_v41 = vadd.f32 %v2046_v36, %v2010_v12  ;;  %v1745_v55 = vmax.f32 %v1649_v6, 0.0  ;;  %v1926_v36 = vpop.permute.xlu1 %1925  ;;  %v3719_v6 = vld [vmem:[#allocation18_spill] sm:$0xff]  ;;  %v3720_v15 = vld [vmem:[#allocation9_spill] sm:$0xff] }
 0x31a   :  { %v1651_v39 = vpop.f32.mrf.mxu1 }
 0x31b   :  { %v2011_v61 = vmul.f32 %v1896_v37, %v1745_v55  ;;  %v1652_v22 = vadd.f32 %v1651_v39, %v1467_v35  ;;  %v1496_v35 = vadd.f32 %v3720_v15, %v3719_v6  ;;  %v1931_v37 = vpop.permute.xlu0 %1930  ;;  %v3732_v6 = vld [vmem:[#allocation17_spill] sm:$0xff] }
 0x31c   :  { %v1653_v0 = vpop.f32.mrf.mxu1 }
 0x31d   :  { %v2048_v26 = vadd.f32 %v2047_v41, %v2011_v61  ;;  %v1746_v20 = vmax.f32 %v1652_v22, 0.0 }
 0x31e   :  { %v1656_v31 = vpop.f32.mrf.mxu1 }
 0x31f   :  { %v2012_v57 = vmul.f32 %v1901_v19, %v1746_v20  ;;  %v1657_v5 = vadd.f32 %v1656_v31, %v1472_v34  ;;  %v3721_v34 = vld [vmem:[#allocation20_spill] sm:$0xff] }
 0x320   :  { %v1658_v59 = vpop.f32.mrf.mxu1 }
 0x321   :  { %v2049_v48 = vadd.f32 %v2048_v26, %v2012_v57  ;;  %v1747_v25 = vmax.f32 %v1657_v5, 0.0  ;;  %v3722_v26 = vld [vmem:[#allocation10_spill] sm:$0xff]  ;;  %v1936_v57 = vpop.permute.xlu1 %1935 }
 0x322   :  { %v1659_v46 = vpop.f32.mrf.mxu1  ;;  %v1499_v20 = vadd.f32 %v3722_v26, %v3721_v34  ;;  %v3734_v34 = vld [vmem:[#allocation19_spill] sm:$0xff] }
 0x323   :  { %v2013_v17 = vmul.f32 %v1906_v40, %v1747_v25  ;;  %v1660_v29 = vadd.f32 %v1659_v46, %v1475_v44  ;;  %v3723_v40 = vld [vmem:[#allocation21_spill] sm:$0xff]  ;;  %v3724_v46 = vld [vmem:[#allocation11_spill] sm:$0xff] }
 0x324   :  { %v1661_v7 = vpop.f32.mrf.mxu1 }
 0x325   :  { %v2050_v56 = vadd.f32 %v2049_v48, %v2013_v17  ;;  %v1748_v13 = vmax.f32 %v1660_v29, 0.0  ;;  %v1941_v48 = vpop.permute.xlu0 %1940  ;;  %v1504_v17 = vadd.f32 %v3724_v46, %v3723_v40 }
 0x326   :  { %v1664_v11 = vpop.f32.mrf.mxu1 }
 0x327   :  { %v2014_v47 = vmul.f32 %v1911_v18, %v1748_v13  ;;  %v1665_v16 = vadd.f32 %v1664_v11, %v1480_v14  ;;  %v1946_v18 = vpop.permute.xlu1 %1945 }
 0x328   :  { %v1666_v42 = vpop.f32.mrf.mxu1 }
 0x329   :  { %v2051_v63 = vadd.f32 %v2050_v56, %v2014_v47  ;;  %v1749_v9 = vmax.f32 %v1665_v16, 0.0  ;;  %v3725_v47 = vld [vmem:[#allocation23_spill] sm:$0xff]  ;;  %v3726_v16 = vld [vmem:[#allocation12_spill] sm:$0xff] }
 0x32a   :  { %v1667_v24 = vpop.f32.mrf.mxu1  ;;  %v1507_v42 = vadd.f32 %v3726_v16, %v3725_v47 }
 0x32b   :  { %v2015_v49 = vmul.f32 %v1916_v1, %v1749_v9  ;;  %v1668_v21 = vadd.f32 %v1667_v24, %v1483_v58 }
 0x32c   :  { %v1669_v28 = vpop.f32.mrf.mxu1 }
 0x32d   :  { %v2052_v3 = vadd.f32 %v2051_v63, %v2015_v49  ;;  %v1750_v50 = vmax.f32 %v1668_v21, 0.0  ;;  %v1951_v63 = vpop.permute.xlu0 %1950  ;;  %v3727_v21 = vld [vmem:[#allocation25_spill] sm:$0xff] }
 0x32e   :  { %v1672_v32 = vpop.f32.mrf.mxu1  ;;  %v3728_v28 = vld [vmem:[#allocation13_spill] sm:$0xff] }
 0x32f   :  { %v2016_v60 = vmul.f32 %v1921_v10, %v1750_v50  ;;  %v1673_v51 = vadd.f32 %v1672_v32, %v1488_v4  ;;  %v1512_v30 = vadd.f32 %v3728_v28, %v3727_v21 }
 0x330   :  { %v1674_v62 = vpop.f32.mrf.mxu1 }
 0x331   :  { %v2053_v38 = vadd.f32 %v2052_v3, %v2016_v60  ;;  %v1751_v45 = vmax.f32 %v1673_v51, 0.0  ;;  %v1956_v3 = vpop.permute.xlu1 %1955  ;;  %v1961_v60 = vpop.permute.xlu0 %1960  ;;  %v3729_v62 = vld [vmem:[#allocation27_spill] sm:$0xff] }
 0x332   :  { %v1675_v23 = vpop.f32.mrf.mxu1  ;;  %v1515_v43 = vadd.f32 %v3730_v2, %v3729_v62 }
 0x333   :  { %v2017_v54 = vmul.f32 %v1926_v36, %v1751_v45  ;;  %v1676_v8 = vadd.f32 %v1675_v23, %v1491_v53 }
 0x334   :  { %v1677_v12 = vpop.f32.mrf.mxu1 }
 0x335   :  { %v2054_v41 = vadd.f32 %v2053_v38, %v2017_v54  ;;  %v1752_v55 = vmax.f32 %v1676_v8, 0.0  ;;  %v926_v54 = vpop.permute.xlu1 %925  ;;  %v3731_v12 = vld [vmem:[#allocation28_spill] sm:$0xff] }
 0x336   :  { %v1680_v39 = vpop.f32.mrf.mxu1  ;;  %v1520_v15 = vadd.f32 %v3732_v6, %v3731_v12 }
 0x337   :  { %v2018_v61 = vmul.f32 %v1931_v37, %v1752_v55  ;;  %v1681_v22 = vadd.f32 %v1680_v39, %v1496_v35  ;;  %v1966_v55 = vpop.permute.xlu0 %1965 }
 0x338   :  { %v1682_v0 = vpop.f32.mrf.mxu1 }
 0x339   :  { %v2055_v19 = vadd.f32 %v2054_v41, %v2018_v61  ;;  %v1753_v31 = vmax.f32 %v1681_v22, 0.0  ;;  %v3733_v0 = vld [vmem:[#allocation30_spill] sm:$0xff] }
 0x33a   :  { %v1683_v5 = vpop.f32.mrf.mxu1  ;;  %v1523_v26 = vadd.f32 %v3734_v34, %v3733_v0 }
 0x33b   :  { %v2019_v59 = vmul.f32 %v1936_v57, %v1753_v31  ;;  %v1684_v44 = vadd.f32 %v1683_v5, %v1499_v20  ;;  %v931_v31 = vpop.permute.xlu1 %930 }
 0x33c   :  { %v1685_v25 = vpop.f32.mrf.mxu1 }
 0x33d   :  { %v2056_v29 = vadd.f32 %v2055_v19, %v2019_v59  ;;  %v1754_v7 = vmax.f32 %v1684_v44, 0.0  ;;  %v1971_v44 = vpop.permute.xlu0 %1970  ;;  %v3735_v25 = vld [vmem:[#allocation22_spill] sm:$0xff] }
 0x33e   :  { %v1688_v14 = vpop.f32.mrf.mxu1  ;;  %v1528_v40 = vadd.f32 %v3735_v25, %v3608_v33 }
 0x33f   :  { %v2020_v56 = vmul.f32 %v1941_v48, %v1754_v7  ;;  %v1689_v13 = vadd.f32 %v1688_v14, %v1504_v17 }
 0x340   :  { %v1690_v11 = vpop.f32.mrf.mxu1 }
 0x341   :  { %v2057_v52 = vadd.f32 %v2056_v29, %v2020_v56  ;;  %v1755_v58 = vmax.f32 %v1689_v13, 0.0  ;;  %v936_v56 = vpop.permute.xlu1 %935 }
 0x342   :  { %v1691_v9 = vpop.f32.mrf.mxu1 }
 0x343   :  { %v2021_v1 = vmul.f32 %v1946_v18, %v1755_v58  ;;  %v1692_v24 = vadd.f32 %v1691_v9, %v1507_v42  ;;  %v3736_v18 = vld [vmem:[#allocation24_spill] sm:$0xff]  ;;  %v1976_v42 = vpop.permute.xlu0 %1975 }
 0x344   :  { %v1693_v49 = vpop.f32.mrf.mxu1  ;;  %v1531_v11 = vadd.f32 %v3736_v18, %v926_v54  ;;  %v2082_v54 = vlaneseq }
 0x345   :  { %v2058_v27 = vadd.f32 %v2057_v52, %v2021_v1  ;;  %v1756_v4 = vmax.f32 %v1692_v24, 0.0  ;;  %v3737_v1 = vld [vmem:[#allocation26_spill] sm:$0xff]  ;;  %v1981_v21 = vpop.permute.xlu1 %1980 }
 0x346   :  { %v1696_v50 = vpop.f32.mrf.mxu1  ;;  %v1536_v24 = vadd.f32 %v3737_v1, %v931_v31  ;;  %v2083_v6 = vshrl.u32 %v2082_v54, 7 }
 0x347   :  { %v2022_v10 = vmul.f32 %v1951_v63, %v1756_v4  ;;  %v1697_v32 = vadd.f32 %v1696_v50, %v1512_v30 }
 0x348   :  { %v1698_v51 = vpop.f32.mrf.mxu1 }
 0x349   :  { %v2059_v53 = vadd.f32 %v2058_v27, %v2022_v10  ;;  %v1757_v38 = vmax.f32 %v1697_v32, 0.0 }
 0x34a   :  { %v1699_v45 = vpop.f32.mrf.mxu1 }
 0x34b   :  { %v2023_v36 = vmul.f32 %v1956_v3, %v1757_v38  ;;  %v1700_v23 = vadd.f32 %v1699_v45, %v1515_v43  ;;  %v3738_v3 = vld [vmem:[#allocation29_spill] sm:$0xff]  ;;  %v1991_v45 = vpop.permute.xlu1 %1990 }
 0x34c   :  { %v1701_v8 = vpop.f32.mrf.mxu1  ;;  %v1539_v50 = vadd.f32 %v3738_v3, %v936_v56 }
 0x34d   :  { %v2060_v35 = vadd.f32 %v2059_v53, %v2023_v36  ;;  %v1758_v41 = vmax.f32 %v1700_v23, 0.0 }
 0x34e   :  { %v1704_v37 = vpop.f32.mrf.mxu1 }
 0x34f   :  { %v2024_v39 = vmul.f32 %v1961_v60, %v1758_v41  ;;  %v1705_v61 = vadd.f32 %v1704_v37, %v1520_v15  ;;  %v1986_v60 = vpop.permute.xlu0 %1985  ;;  %v2084_v41 = vsub.s32 0, %v2083_v6 }
 0x350   :  { %v1706_v22 = vpop.f32.mrf.mxu1 }
 0x351   :  { %v2061_v20 = vadd.f32 %v2060_v35, %v2024_v39  ;;  %v1759_v19 = vmax.f32 %v1705_v61, 0.0 }
 0x352   :  { %v1707_v57 = vpop.f32.mrf.mxu1 }
 0x353   :  { %v2025_v5 = vmul.f32 %v1966_v55, %v1759_v19  ;;  %v1708_v59 = vadd.f32 %v1707_v57, %v1523_v26  ;;  %v2080_v37 = vpop.permute.xlu0 %2079 }
 0x354   :  { %v1709_v48 = vpop.f32.mrf.mxu1  ;;  %v2085_v61 = vrot.slane %v2080_v37, %v2084_v41 }
 0x355   :  { %v2062_v46 = vadd.f32 %v2061_v20, %v2025_v5  ;;  %v1760_v17 = vmax.f32 %v1708_v59, 0.0 }
 0x356   :  { %v1712_v29 = vpop.f32.mrf.mxu1 }
 0x357   :  { %v2026_v7 = vmul.f32 %v1971_v44, %v1760_v17  ;;  %v1713_v14 = vadd.f32 %v1712_v29, %v1528_v40 }
 0x358   :  { %v1714_v13 = vpop.f32.mrf.mxu1 }
 0x359   :  { %v2063_v47 = vadd.f32 %v2062_v46, %v2026_v7  ;;  %v1761_v16 = vmax.f32 %v1713_v14, 0.0 }
 0x35a   :  { %v1715_v52 = vpop.f32.mrf.mxu1 }
 0x35b   :  { %v2027_v58 = vmul.f32 %v1976_v42, %v1761_v16  ;;  %v1716_v63 = vadd.f32 %v1715_v52, %v1531_v11 }
 0x35c   :  { %v1717_v9 = vpop.f32.mrf.mxu1 }
 0x35d   :  { %v2064_v49 = vadd.f32 %v2063_v47, %v2027_v58  ;;  %v1762_v33 = vmax.f32 %v1716_v63, 0.0 }
 0x35e   :  { %v1720_v28 = vpop.f32.mrf.mxu1 }
 0x35f   :  { %v2028_v30 = vmul.f32 %v1981_v21, %v1762_v33  ;;  %v1721_v27 = vadd.f32 %v1720_v28, %v1536_v24 }
 0x360   :  { %v1722_v4 = vpop.f32.mrf.mxu1 }
 0x361   :  { %v2065_v10 = vadd.f32 %v2064_v49, %v2028_v30  ;;  %v1763_v32 = vmax.f32 %v1721_v27, 0.0 }
 0x362   :  { %v1723_v51 = vpop.f32.mrf.mxu1 }
 0x363   :  { %v2029_v62 = vmul.f32 %v1986_v60, %v1763_v32  ;;  %v1724_v2 = vadd.f32 %v1723_v51, %v1539_v50 }
 0x364   :  { %v1725_v43 = vpop.f32.mrf.mxu1 }
 0x365   :  { %v2066_v53 = vadd.f32 %v2065_v10, %v2029_v62  ;;  %v1764_v38 = vmax.f32 %v1724_v2, 0.0 }
 0x367   :  { %v2030_v36 = vmul.f32 %v1991_v45, %v1764_v38 }
 0x369   :  { %v2068_v23 = vsel %vm2067_vm3, %v2030_v36, 0.0 }
 0x36a   :  { %v2069_v8 = vadd.f32 %v2068_v23, %v2066_v53 }
 0x36c   :  { %v2070_v12 = vrot.slane %v2069_v8, 4 }
 0x36e   :  { %v2071_v15 = vadd.f32 %v2070_v12, %v2069_v8 }
 0x370   :  { %v2072_v35 = vrot.slane %v2071_v15, 2 }
 0x372   :  { %v2073_v55 = vadd.f32 %v2072_v35, %v2071_v15 }
 0x374   :  { %v2074_v39 = vrot.slane %v2073_v55, 1 }
 0x376   :  { %v2075_v22 = vadd.f32 %v2074_v39, %v2073_v55 }
 0x378   :  { %v2086_v0 = vadd.f32 %v2085_v61, %v2075_v22 }
 0x37a   :  { %2574 = vtanh.f32 %v2086_v0 }
 0x387   :  { %v2575_v34 = vpop.eup %2574 }
 0x388   :  { %2088 = vst [vmem:[#allocation3] sm:$0x1] %v2575_v34 }
 0x389   :  { %2587 = shalt.err (!%p2584_p4)
}
 0x38a   :  { %2098 = dma.vmem_to_hbm [thread:$0]  %s2096_s27, 16, %s3688_s6, [#allocation4]  }
 0x38b   :  { %2596 = dma.done.wait [#allocation4], 16  }
 0x38c   :  { %2597 = vsyncadd [#allocation4], 4294967280 }
 0x38d   :  { %2102 = vsyncpa [#allocation4], 1 }

</bundles_post_ra>
